<compile_context>
chip_gen: v7x
topology: tpu7x:2x2x1
jax: 0.10.0
libtpu: 0.0.40
codegen_flags: <defaults>
</compile_context>

<pallas_src>
import functools
import math

import jax
import jax.numpy as jnp
from jax.experimental import pallas as pl
from jax.experimental.pallas import tpu as pltpu

# Above every generation's scoped-VMEM default (16/32 MiB), below v7x's 64 MiB
# physical capacity.
_VMEM_LIMIT_BYTES = 48 * 1024 * 1024


def _round_up(x, m):
    return ((x + m - 1) // m) * m


def _row_tile(m, max_tile=256):
    # Row tile for the FFN kernel: big enough to amortize the ~0.35us
    # per-grid-step overhead, small enough that the x/out tiles plus the
    # (tm, dim_ff) f32 intermediate plus resident bf16 weights stay inside the
    # scoped-VMEM budget on v7x.  Aim for >= 2 grid steps so both v7x
    # TensorCores get work on the "parallel" axis.
    half = _round_up(max(1, (m + 1) // 2), 8)
    return max(8, min(max_tile, half))


# ----------------------------------------------------------------------------
# Fused cross-attention block:
#   QKV proj -> per-head softmax(QK^T)V -> head-mean probs
#   -> out proj -> +residual -> LayerNorm(norm2)
# ----------------------------------------------------------------------------
def _cross_attn_block_kernel(tgt_ref, mem_ref, wq_ref, bq_ref, wk_ref, bk_ref,
                             wv_ref, bv_ref, wo_ref, bo_ref, g2_ref, bb2_ref,
                             x_ref, probs_ref, *, nhead, eps):
    T, E = tgt_ref.shape[1], tgt_ref.shape[2]
    S = mem_ref.shape[1]
    dh = E // nhead
    scale = 1.0 / math.sqrt(dh)

    tgt = tgt_ref[0]                        # (T, E) f32
    mem = mem_ref[0]                        # (S, E) f32
    tgt_bf = tgt.astype(jnp.bfloat16)
    mem_bf = mem.astype(jnp.bfloat16)

    # Q/K/V projections: bf16 MXU operands, f32 accumulation, f32 bias add.
    q = jnp.dot(tgt_bf, wq_ref[...], preferred_element_type=jnp.float32) + bq_ref[...]
    k = jnp.dot(mem_bf, wk_ref[...], preferred_element_type=jnp.float32) + bk_ref[...]
    v = jnp.dot(mem_bf, wv_ref[...], preferred_element_type=jnp.float32) + bv_ref[...]
    q = (q * scale).astype(jnp.bfloat16)
    k = k.astype(jnp.bfloat16)
    v = v.astype(jnp.bfloat16)

    # All heads handled inside this grid step via static feature slices.
    # No key-position masking needed: the S block is full-extent (no padding).
    attn_parts = []
    p_sum = jnp.zeros((T, S), jnp.float32)
    for h in range(nhead):
        sl = slice(h * dh, (h + 1) * dh)
        qh, kh, vh = q[:, sl], k[:, sl], v[:, sl]
        s = jax.lax.dot_general(qh, kh, (((1,), (1,)), ((), ())),
                                preferred_element_type=jnp.float32)      # (T, S)
        s = s - jnp.max(s, axis=-1, keepdims=True)
        p = jnp.exp(s)
        p = p * pl.reciprocal(jnp.sum(p, axis=-1, keepdims=True), approx=True)
        p_sum = p_sum + p
        attn_parts.append(jnp.dot(p.astype(jnp.bfloat16), vh,
                                  preferred_element_type=jnp.float32))   # (T, dh)

    # Head-averaged attention probabilities (PyTorch MHA default output).
    probs_ref[0] = (p_sum * (1.0 / nhead)).astype(probs_ref.dtype)

    # Output projection + residual add + LayerNorm(norm2) epilogue (f32 math).
    attn = jnp.concatenate(attn_parts, axis=-1)                          # (T, E)
    y = jnp.dot(attn.astype(jnp.bfloat16), wo_ref[...],
                preferred_element_type=jnp.float32) + bo_ref[...]
    y = y + tgt
    mean = jnp.mean(y, axis=-1, keepdims=True)
    yc = y - mean
    var = jnp.mean(yc * yc, axis=-1, keepdims=True)
    x_ref[0] = (yc * jax.lax.rsqrt(var + eps) * g2_ref[...] + bb2_ref[...]
                ).astype(x_ref.dtype)


def pallas_cross_attention_block(tgt_bt, mem_bt, p, *, nhead, eps=1e-5):
    """tgt_bt: (B, T, E), mem_bt: (B, S, E); params already prepared
    (bf16 (in,out)-layout weights, (1, dim) f32 biases / LayerNorm params).
    Returns (norm2(tgt + out_proj(attn)) as (B, T, E),
             head-averaged attention probs (B, T, S))."""
    B, T, E = tgt_bt.shape
    S = mem_bt.shape[1]
    const = lambda b: (0, 0)

    x, probs = pl.pallas_call(
        functools.partial(_cross_attn_block_kernel, nhead=nhead, eps=eps),
        out_shape=(
            jax.ShapeDtypeStruct((B, T, E), tgt_bt.dtype),
            jax.ShapeDtypeStruct((B, T, S), jnp.float32),
        ),
        grid_spec=pltpu.PrefetchScalarGridSpec(
            num_scalar_prefetch=0,
            grid=(B,),
            in_specs=[
                pl.BlockSpec((1, T, E), lambda b: (b, 0, 0)),   # tgt (batch slab)
                pl.BlockSpec((1, S, E), lambda b: (b, 0, 0)),   # memory
                pl.BlockSpec((E, E), const), pl.BlockSpec((1, E), const),  # wq, bq
                pl.BlockSpec((E, E), const), pl.BlockSpec((1, E), const),  # wk, bk
                pl.BlockSpec((E, E), const), pl.BlockSpec((1, E), const),  # wv, bv
                pl.BlockSpec((E, E), const), pl.BlockSpec((1, E), const),  # wo, bo
                pl.BlockSpec((1, E), const), pl.BlockSpec((1, E), const),  # norm2 g,b
            ],
            out_specs=[
                pl.BlockSpec((1, T, E), lambda b: (b, 0, 0)),
                pl.BlockSpec((1, T, S), lambda b: (b, 0, 0)),
            ],
        ),
        compiler_params=pltpu.CompilerParams(
            dimension_semantics=("parallel",),
            vmem_limit_bytes=_VMEM_LIMIT_BYTES,
        ),
    )(tgt_bt, mem_bt,
      p["wq"], p["bq"], p["wk"], p["bk"], p["wv"], p["bv"],
      p["wo"], p["bo"], p["norm2_g"], p["norm2_b"])
    return x, probs


# ----------------------------------------------------------------------------
# Fused FFN block: linear1 -> ReLU -> linear2 -> +residual -> LayerNorm(norm3)
# ----------------------------------------------------------------------------
def _ffn_block_kernel(x_ref, w1_ref, b1_ref, w2_ref, b2_ref, g_ref, bb_ref,
                      o_ref, *, eps):
    x = x_ref[...]                                                  # (tm, E) f32
    h = jnp.dot(x.astype(jnp.bfloat16), w1_ref[...],
                preferred_element_type=jnp.float32) + b1_ref[...]
    h = jnp.maximum(h, 0.0)
    y = jnp.dot(h.astype(jnp.bfloat16), w2_ref[...],
                preferred_element_type=jnp.float32) + b2_ref[...]
    y = y + x                                                       # residual
    mean = jnp.mean(y, axis=-1, keepdims=True)
    yc = y - mean
    var = jnp.mean(yc * yc, axis=-1, keepdims=True)
    o_ref[...] = (yc * jax.lax.rsqrt(var + eps) * g_ref[...] + bb_ref[...]
                  ).astype(o_ref.dtype)


def pallas_ffn_block(x2d, p, *, eps=1e-5, max_tile=256):
    """x2d: (M, E) -> (M, E). The (tm, dim_ff) intermediate never leaves VMEM."""
    M, E = x2d.shape
    F = p["w1"].shape[1]
    tm = _row_tile(M, max_tile)
    Mp = _round_up(M, tm)
    xp = jnp.pad(x2d, ((0, Mp - M), (0, 0))) if Mp != M else x2d
    const = lambda i: (0, 0)

    out = pl.pallas_call(
        functools.partial(_ffn_block_kernel, eps=eps),
        out_shape=jax.ShapeDtypeStruct((Mp, E), x2d.dtype),
        grid_spec=pltpu.PrefetchScalarGridSpec(
            num_scalar_prefetch=0,
            grid=(Mp // tm,),
            in_specs=[
                pl.BlockSpec((tm, E), lambda i: (i, 0)),                    # x rows
                pl.BlockSpec((E, F), const), pl.BlockSpec((1, F), const),   # w1, b1
                pl.BlockSpec((F, E), const), pl.BlockSpec((1, E), const),   # w2, b2
                pl.BlockSpec((1, E), const), pl.BlockSpec((1, E), const),   # norm3 g,b
            ],
            out_specs=pl.BlockSpec((tm, E), lambda i: (i, 0)),
        ),
        compiler_params=pltpu.CompilerParams(
            dimension_semantics=("parallel",),
            vmem_limit_bytes=_VMEM_LIMIT_BYTES,
        ),
    )(xp, p["w1"], p["b1"], p["w2"], p["b2"], p["norm3_g"], p["norm3_b"])
    return out[:M] if Mp != M else out


# ----------------------------------------------------------------------------
# Parameter prep (hoisted out of the forward hot path) + full forward
# ----------------------------------------------------------------------------
def prepare_params(raw):
    """One-time prep: matmul weights ((in, out) layout) cast to bf16 for the
    MXU; biases / LayerNorm params reshaped to (1, dim) and kept f32."""
    prep = {}
    for name in ("wq", "wk", "wv", "wo", "w1", "w2"):
        prep[name] = raw[name].astype(jnp.bfloat16)
    for name in ("bq", "bk", "bv", "bo", "b1", "b2",
                 "norm2_g", "norm2_b", "norm3_g", "norm3_b"):
        prep[name] = raw[name].reshape(1, -1).astype(jnp.float32)
    return prep


def transformer_decoder_layer_forward(tgt, memory, prep, *, nhead, eps=1e-5):
    """tgt: (T, B, E), memory: (S, B, E) — PyTorch MHA default (seq, batch, emb).
    Returns (out (T, B, E), attn_weights (B, T, S) averaged over heads)."""
    T, B, E = tgt.shape

    # Single batch-first transpose per input; every kernel then indexes whole
    # (T/S, E) slabs per batch element — no q/k/v/attn head-transpose copies.
    tgt_bt = jnp.transpose(tgt, (1, 0, 2))      # (B, T, E)
    mem_bt = jnp.transpose(memory, (1, 0, 2))   # (B, S, E)

    x, attn_weights = pallas_cross_attention_block(tgt_bt, mem_bt, prep,
                                                   nhead=nhead, eps=eps)
    out = pallas_ffn_block(x.reshape(B * T, E), prep, eps=eps)
    out = jnp.transpose(out.reshape(B, T, E), (1, 0, 2))            # (T, B, E)
    return out, attn_weights


# ----------------------------------------------------------------------------
# Pure-JAX f32 reference for correctness checking
# ----------------------------------------------------------------------------
def reference_forward(tgt, memory, params, *, nhead, eps=1e-5):
    with jax.default_matmul_precision("highest"):
        T, B, E = tgt.shape
        S = memory.shape[0]
        Dh = E // nhead
        q = tgt @ params["wq"] + params["bq"]
        k = memory @ params["wk"] + params["bk"]
        v = memory @ params["wv"] + params["bv"]
        qh = q.reshape(T, B * nhead, Dh).transpose(1, 0, 2)
        kh = k.reshape(S, B * nhead, Dh).transpose(1, 0, 2)
        vh = v.reshape(S, B * nhead, Dh).transpose(1, 0, 2)
        scores = jnp.einsum("btd,bsd->bts", qh, kh) / math.sqrt(Dh)
        p = jax.nn.softmax(scores, axis=-1)
        attn = jnp.einsum("bts,bsd->btd", p, vh)
        attn = attn.transpose(1, 0, 2).reshape(T, B, E)
        attn = attn @ params["wo"] + params["bo"]
        attn_weights = p.reshape(B, nhead, T, S).mean(axis=1)

        def ln(x, g, b):
            m = x.mean(-1, keepdims=True)
            var = ((x - m) ** 2).mean(-1, keepdims=True)
            return (x - m) / jnp.sqrt(var + eps) * g + b

        x = ln(tgt + attn, params["norm2_g"], params["norm2_b"])
        h = jnp.maximum(x @ params["w1"] + params["b1"], 0.0)
        ff = h @ params["w2"] + params["b2"]
        out = ln(x + ff, params["norm3_g"], params["norm3_b"])
        return out, attn_weights


if __name__ == "__main__":
    d_model, nhead, dim_ff = 256, 2, 512     # head_dim = 128 (lane-aligned slices)
    T, S, B = 7, 12, 2                       # non-8/128 seq lens exercise full-extent blocks

    key = jax.random.PRNGKey(0)
    ks = jax.random.split(key, 20)
    bnd_e = 1.0 / math.sqrt(d_model)
    bnd_f = 1.0 / math.sqrt(dim_ff)

    tgt = jax.random.normal(ks[0], (T, B, d_model), jnp.float32)
    memory = jax.random.normal(ks[1], (S, B, d_model), jnp.float32)

    params = {
        "wq": jax.random.uniform(ks[2], (d_model, d_model), jnp.float32, -bnd_e, bnd_e),
        "bq": jax.random.uniform(ks[3], (d_model,), jnp.float32, -bnd_e, bnd_e),
        "wk": jax.random.uniform(ks[4], (d_model, d_model), jnp.float32, -bnd_e, bnd_e),
        "bk": jax.random.uniform(ks[5], (d_model,), jnp.float32, -bnd_e, bnd_e),
        "wv": jax.random.uniform(ks[6], (d_model, d_model), jnp.float32, -bnd_e, bnd_e),
        "bv": jax.random.uniform(ks[7], (d_model,), jnp.float32, -bnd_e, bnd_e),
        "wo": jax.random.uniform(ks[8], (d_model, d_model), jnp.float32, -bnd_e, bnd_e),
        "bo": jax.random.uniform(ks[9], (d_model,), jnp.float32, -bnd_e, bnd_e),
        "w1": jax.random.uniform(ks[10], (d_model, dim_ff), jnp.float32, -bnd_e, bnd_e),
        "b1": jax.random.uniform(ks[11], (dim_ff,), jnp.float32, -bnd_e, bnd_e),
        "w2": jax.random.uniform(ks[12], (dim_ff, d_model), jnp.float32, -bnd_f, bnd_f),
        "b2": jax.random.uniform(ks[13], (d_model,), jnp.float32, -bnd_f, bnd_f),
        "norm2_g": 1.0 + 0.1 * jax.random.normal(ks[14], (d_model,), jnp.float32),
        "norm2_b": 0.1 * jax.random.normal(ks[15], (d_model,), jnp.float32),
        "norm3_g": 1.0 + 0.1 * jax.random.normal(ks[16], (d_model,), jnp.float32),
        "norm3_b": 0.1 * jax.random.normal(ks[17], (d_model,), jnp.float32),
    }

    prep = prepare_params(params)            # one-time: bf16 weights, (1, dim) biases
    forward = jax.jit(functools.partial(transformer_decoder_layer_forward, nhead=nhead))

    out, attn_w = forward(tgt, memory, prep)
    out = jax.block_until_ready(out)
    attn_w = jax.block_until_ready(attn_w)

    out_ref, attn_w_ref = reference_forward(tgt, memory, params, nhead=nhead)

    assert out.shape == (T, B, d_model)
    assert attn_w.shape == (B, T, S)
    # bf16 MXU operands (f32 accumulation) vs f32 reference: tolerance widened
    # accordingly for the layer output; attention probs stay tight.
    assert jnp.allclose(out, out_ref, atol=1e-2, rtol=1e-2), \
        float(jnp.max(jnp.abs(out - out_ref)))
    assert jnp.allclose(attn_w, attn_w_ref, atol=2e-3, rtol=2e-3), \
        float(jnp.max(jnp.abs(attn_w - attn_w_ref)))

    print("KERNEL_OK")
</pallas_src>

<mosaic_0001>
module attributes {stable_mosaic.version = 11 : i64} {
  func.func @_cross_attn_block_kernel(%arg0: i32, %arg1: memref<1x7x256xf32, #tpu.memory_space<vmem>>, %arg2: memref<1x12x256xf32, #tpu.memory_space<vmem>>, %arg3: memref<256x256xbf16, #tpu.memory_space<vmem>>, %arg4: memref<1x256xf32, #tpu.memory_space<vmem>>, %arg5: memref<256x256xbf16, #tpu.memory_space<vmem>>, %arg6: memref<1x256xf32, #tpu.memory_space<vmem>>, %arg7: memref<256x256xbf16, #tpu.memory_space<vmem>>, %arg8: memref<1x256xf32, #tpu.memory_space<vmem>>, %arg9: memref<256x256xbf16, #tpu.memory_space<vmem>>, %arg10: memref<1x256xf32, #tpu.memory_space<vmem>>, %arg11: memref<1x256xf32, #tpu.memory_space<vmem>>, %arg12: memref<1x256xf32, #tpu.memory_space<vmem>>, %arg13: memref<1x7x256xf32, #tpu.memory_space<vmem>>, %arg14: memref<1x7x12xf32, #tpu.memory_space<vmem>>) attributes {dimension_semantics = [#tpu.dimension_semantics<parallel>], iteration_bounds = array<i64: 2>, scalar_prefetch = 0 : i64, scratch_operands = 0 : i64, tpu.core_type = #tpu.core_type<tc>, window_params = [{transform_indices = @transform_0, window_bounds = array<i64: 1, 7, 256>}, {transform_indices = @transform_1, window_bounds = array<i64: 1, 12, 256>}, {pipeline_mode = #tpu.pipeline_mode<synchronous>, transform_indices = @transform_2, window_bounds = array<i64: 256, 256>}, {pipeline_mode = #tpu.pipeline_mode<synchronous>, transform_indices = @transform_3, window_bounds = array<i64: 1, 256>}, {pipeline_mode = #tpu.pipeline_mode<synchronous>, transform_indices = @transform_4, window_bounds = array<i64: 256, 256>}, {pipeline_mode = #tpu.pipeline_mode<synchronous>, transform_indices = @transform_5, window_bounds = array<i64: 1, 256>}, {pipeline_mode = #tpu.pipeline_mode<synchronous>, transform_indices = @transform_6, window_bounds = array<i64: 256, 256>}, {pipeline_mode = #tpu.pipeline_mode<synchronous>, transform_indices = @transform_7, window_bounds = array<i64: 1, 256>}, {pipeline_mode = #tpu.pipeline_mode<synchronous>, transform_indices = @transform_8, window_bounds = array<i64: 256, 256>}, {pipeline_mode = #tpu.pipeline_mode<synchronous>, transform_indices = @transform_9, window_bounds = array<i64: 1, 256>}, {pipeline_mode = #tpu.pipeline_mode<synchronous>, transform_indices = @transform_10, window_bounds = array<i64: 1, 256>}, {pipeline_mode = #tpu.pipeline_mode<synchronous>, transform_indices = @transform_11, window_bounds = array<i64: 1, 256>}, {transform_indices = @transform_12, window_bounds = array<i64: 1, 7, 256>}, {transform_indices = @transform_13, window_bounds = array<i64: 1, 7, 12>}]} {
    %c0 = arith.constant 0 : index
    %c0_0 = arith.constant 0 : index
    %c0_1 = arith.constant 0 : index
    %0 = vector.load %arg1[%c0, %c0_0, %c0_1] : memref<1x7x256xf32, #tpu.memory_space<vmem>>, vector<1x7x256xf32>
    %1 = vector.shape_cast %0 : vector<1x7x256xf32> to vector<7x256xf32>
    %c0_2 = arith.constant 0 : index
    %c0_3 = arith.constant 0 : index
    %c0_4 = arith.constant 0 : index
    %2 = vector.load %arg2[%c0_2, %c0_3, %c0_4] : memref<1x12x256xf32, #tpu.memory_space<vmem>>, vector<1x12x256xf32>
    %3 = vector.shape_cast %2 : vector<1x12x256xf32> to vector<12x256xf32>
    %4 = arith.truncf %1 : vector<7x256xf32> to vector<7x256xbf16>
    %5 = arith.truncf %3 : vector<12x256xf32> to vector<12x256xbf16>
    %c0_5 = arith.constant 0 : index
    %c0_6 = arith.constant 0 : index
    %6 = vector.load %arg3[%c0_5, %c0_6] : memref<256x256xbf16, #tpu.memory_space<vmem>>, vector<256x256xbf16>
    %cst = arith.constant dense<0.000000e+00> : vector<7x256xf32>
    %7 = tpu.matmul %4, %6, %cst {dimension_numbers = #tpu.dot_dimension_numbers<[1], [0], [0], [1], [0, 0, 1, 1], [], []>} : vector<7x256xbf16>, vector<256x256xbf16>, vector<7x256xf32> -> vector<7x256xf32>
    %c0_7 = arith.constant 0 : index
    %c0_8 = arith.constant 0 : index
    %8 = vector.load %arg4[%c0_7, %c0_8] : memref<1x256xf32, #tpu.memory_space<vmem>>, vector<1x256xf32>
    %9 = vector.broadcast %8 : vector<1x256xf32> to vector<7x256xf32>
    %10 = arith.addf %7, %9 : vector<7x256xf32>
    %c0_9 = arith.constant 0 : index
    %c0_10 = arith.constant 0 : index
    %11 = vector.load %arg5[%c0_9, %c0_10] : memref<256x256xbf16, #tpu.memory_space<vmem>>, vector<256x256xbf16>
    %cst_11 = arith.constant dense<0.000000e+00> : vector<12x256xf32>
    %12 = tpu.matmul %5, %11, %cst_11 {dimension_numbers = #tpu.dot_dimension_numbers<[1], [0], [0], [1], [0, 0, 1, 1], [], []>} : vector<12x256xbf16>, vector<256x256xbf16>, vector<12x256xf32> -> vector<12x256xf32>
    %c0_12 = arith.constant 0 : index
    %c0_13 = arith.constant 0 : index
    %13 = vector.load %arg6[%c0_12, %c0_13] : memref<1x256xf32, #tpu.memory_space<vmem>>, vector<1x256xf32>
    %14 = vector.broadcast %13 : vector<1x256xf32> to vector<12x256xf32>
    %15 = arith.addf %12, %14 : vector<12x256xf32>
    %c0_14 = arith.constant 0 : index
    %c0_15 = arith.constant 0 : index
    %16 = vector.load %arg7[%c0_14, %c0_15] : memref<256x256xbf16, #tpu.memory_space<vmem>>, vector<256x256xbf16>
    %cst_16 = arith.constant dense<0.000000e+00> : vector<12x256xf32>
    %17 = tpu.matmul %5, %16, %cst_16 {dimension_numbers = #tpu.dot_dimension_numbers<[1], [0], [0], [1], [0, 0, 1, 1], [], []>} : vector<12x256xbf16>, vector<256x256xbf16>, vector<12x256xf32> -> vector<12x256xf32>
    %c0_17 = arith.constant 0 : index
    %c0_18 = arith.constant 0 : index
    %18 = vector.load %arg8[%c0_17, %c0_18] : memref<1x256xf32, #tpu.memory_space<vmem>>, vector<1x256xf32>
    %19 = vector.broadcast %18 : vector<1x256xf32> to vector<12x256xf32>
    %20 = arith.addf %17, %19 : vector<12x256xf32>
    %cst_19 = arith.constant 0.0883883461 : f32
    %21 = vector.broadcast %cst_19 : f32 to vector<7x256xf32>
    %22 = arith.mulf %10, %21 : vector<7x256xf32>
    %23 = arith.truncf %22 : vector<7x256xf32> to vector<7x256xbf16>
    %24 = arith.truncf %15 : vector<12x256xf32> to vector<12x256xbf16>
    %25 = arith.truncf %20 : vector<12x256xf32> to vector<12x256xbf16>
    %cst_20 = arith.constant 0.000000e+00 : f32
    %26 = vector.broadcast %cst_20 : f32 to vector<7x12xf32>
    %27 = vector.extract_strided_slice %23 {offsets = [0, 0], sizes = [7, 128], strides = [1, 1]} : vector<7x256xbf16> to vector<7x128xbf16>
    %28 = vector.extract_strided_slice %24 {offsets = [0, 0], sizes = [12, 128], strides = [1, 1]} : vector<12x256xbf16> to vector<12x128xbf16>
    %29 = vector.extract_strided_slice %25 {offsets = [0, 0], sizes = [12, 128], strides = [1, 1]} : vector<12x256xbf16> to vector<12x128xbf16>
    %cst_21 = arith.constant dense<0.000000e+00> : vector<7x12xf32>
    %30 = tpu.matmul %27, %28, %cst_21 {dimension_numbers = #tpu.dot_dimension_numbers<[1], [1], [0], [0], [0, 0, 1, 0], [], []>} : vector<7x128xbf16>, vector<12x128xbf16>, vector<7x12xf32> -> vector<7x12xf32>
    %cst_22 = arith.constant dense<0xFF800000> : vector<7xf32>
    %31 = vector.multi_reduction <maximumf>, %30, %cst_22 [1] : vector<7x12xf32> to vector<7xf32>
    %32 = vector.shape_cast %31 : vector<7xf32> to vector<7x1xf32>
    %33 = vector.broadcast %32 : vector<7x1xf32> to vector<7x12xf32>
    %34 = arith.subf %30, %33 : vector<7x12xf32>
    %35 = math.exp %34 : vector<7x12xf32>
    %cst_23 = arith.constant dense<0.000000e+00> : vector<7xf32>
    %36 = vector.multi_reduction <add>, %35, %cst_23 [1] : vector<7x12xf32> to vector<7xf32>
    %37 = vector.shape_cast %36 : vector<7xf32> to vector<7x1xf32>
    %38 = tpu.reciprocal %37 {approx = true} : vector<7x1xf32> -> vector<7x1xf32>
    %39 = vector.broadcast %38 : vector<7x1xf32> to vector<7x12xf32>
    %40 = arith.mulf %35, %39 : vector<7x12xf32>
    %41 = arith.addf %26, %40 : vector<7x12xf32>
    %42 = arith.truncf %40 : vector<7x12xf32> to vector<7x12xbf16>
    %cst_24 = arith.constant dense<0.000000e+00> : vector<7x128xf32>
    %43 = tpu.matmul %42, %29, %cst_24 {dimension_numbers = #tpu.dot_dimension_numbers<[1], [0], [0], [1], [0, 0, 1, 1], [], []>} : vector<7x12xbf16>, vector<12x128xbf16>, vector<7x128xf32> -> vector<7x128xf32>
    %44 = vector.extract_strided_slice %23 {offsets = [0, 128], sizes = [7, 128], strides = [1, 1]} : vector<7x256xbf16> to vector<7x128xbf16>
    %45 = vector.extract_strided_slice %24 {offsets = [0, 128], sizes = [12, 128], strides = [1, 1]} : vector<12x256xbf16> to vector<12x128xbf16>
    %46 = vector.extract_strided_slice %25 {offsets = [0, 128], sizes = [12, 128], strides = [1, 1]} : vector<12x256xbf16> to vector<12x128xbf16>
    %cst_25 = arith.constant dense<0.000000e+00> : vector<7x12xf32>
    %47 = tpu.matmul %44, %45, %cst_25 {dimension_numbers = #tpu.dot_dimension_numbers<[1], [1], [0], [0], [0, 0, 1, 0], [], []>} : vector<7x128xbf16>, vector<12x128xbf16>, vector<7x12xf32> -> vector<7x12xf32>
    %cst_26 = arith.constant dense<0xFF800000> : vector<7xf32>
    %48 = vector.multi_reduction <maximumf>, %47, %cst_26 [1] : vector<7x12xf32> to vector<7xf32>
    %49 = vector.shape_cast %48 : vector<7xf32> to vector<7x1xf32>
    %50 = vector.broadcast %49 : vector<7x1xf32> to vector<7x12xf32>
    %51 = arith.subf %47, %50 : vector<7x12xf32>
    %52 = math.exp %51 : vector<7x12xf32>
    %cst_27 = arith.constant dense<0.000000e+00> : vector<7xf32>
    %53 = vector.multi_reduction <add>, %52, %cst_27 [1] : vector<7x12xf32> to vector<7xf32>
    %54 = vector.shape_cast %53 : vector<7xf32> to vector<7x1xf32>
    %55 = tpu.reciprocal %54 {approx = true} : vector<7x1xf32> -> vector<7x1xf32>
    %56 = vector.broadcast %55 : vector<7x1xf32> to vector<7x12xf32>
    %57 = arith.mulf %52, %56 : vector<7x12xf32>
    %58 = arith.addf %41, %57 : vector<7x12xf32>
    %59 = arith.truncf %57 : vector<7x12xf32> to vector<7x12xbf16>
    %cst_28 = arith.constant dense<0.000000e+00> : vector<7x128xf32>
    %60 = tpu.matmul %59, %46, %cst_28 {dimension_numbers = #tpu.dot_dimension_numbers<[1], [0], [0], [1], [0, 0, 1, 1], [], []>} : vector<7x12xbf16>, vector<12x128xbf16>, vector<7x128xf32> -> vector<7x128xf32>
    %cst_29 = arith.constant 5.000000e-01 : f32
    %61 = vector.broadcast %cst_29 : f32 to vector<7x12xf32>
    %62 = arith.mulf %58, %61 : vector<7x12xf32>
    %c0_30 = arith.constant 0 : index
    %c0_31 = arith.constant 0 : index
    %c0_32 = arith.constant 0 : index
    %63 = vector.load %arg14[%c0_30, %c0_31, %c0_32] : memref<1x7x12xf32, #tpu.memory_space<vmem>>, vector<1x7x12xf32>
    %64 = vector.shape_cast %63 : vector<1x7x12xf32> to vector<7x12xf32>
    %65 = vector.shape_cast %62 : vector<7x12xf32> to vector<1x7x12xf32>
    tpu.vector_store %arg14[%c0_30, %c0_31, %c0_32], %65 {strides = array<i32>} : memref<1x7x12xf32, #tpu.memory_space<vmem>>, vector<1x7x12xf32>,
    %66 = tpu.concatenate %43, %60 in 1 : vector<7x128xf32>, vector<7x128xf32> -> vector<7x256xf32>
    %67 = arith.truncf %66 : vector<7x256xf32> to vector<7x256xbf16>
    %c0_33 = arith.constant 0 : index
    %c0_34 = arith.constant 0 : index
    %68 = vector.load %arg9[%c0_33, %c0_34] : memref<256x256xbf16, #tpu.memory_space<vmem>>, vector<256x256xbf16>
    %cst_35 = arith.constant dense<0.000000e+00> : vector<7x256xf32>
    %69 = tpu.matmul %67, %68, %cst_35 {dimension_numbers = #tpu.dot_dimension_numbers<[1], [0], [0], [1], [0, 0, 1, 1], [], []>} : vector<7x256xbf16>, vector<256x256xbf16>, vector<7x256xf32> -> vector<7x256xf32>
    %c0_36 = arith.constant 0 : index
    %c0_37 = arith.constant 0 : index
    %70 = vector.load %arg10[%c0_36, %c0_37] : memref<1x256xf32, #tpu.memory_space<vmem>>, vector<1x256xf32>
    %71 = vector.broadcast %70 : vector<1x256xf32> to vector<7x256xf32>
    %72 = arith.addf %69, %71 : vector<7x256xf32>
    %73 = arith.addf %72, %1 : vector<7x256xf32>
    %cst_38 = arith.constant dense<0.000000e+00> : vector<7xf32>
    %74 = vector.multi_reduction <add>, %73, %cst_38 [1] : vector<7x256xf32> to vector<7xf32>
    %75 = vector.shape_cast %74 : vector<7xf32> to vector<7x1xf32>
    %cst_39 = arith.constant 2.560000e+02 : f32
    %76 = vector.broadcast %cst_39 : f32 to vector<7x1xf32>
    %77 = arith.divf %75, %76 : vector<7x1xf32>
    %78 = vector.broadcast %77 : vector<7x1xf32> to vector<7x256xf32>
    %79 = arith.subf %73, %78 : vector<7x256xf32>
    %80 = arith.mulf %79, %79 : vector<7x256xf32>
    %cst_40 = arith.constant dense<0.000000e+00> : vector<7xf32>
    %81 = vector.multi_reduction <add>, %80, %cst_40 [1] : vector<7x256xf32> to vector<7xf32>
    %82 = vector.shape_cast %81 : vector<7xf32> to vector<7x1xf32>
    %cst_41 = arith.constant 2.560000e+02 : f32
    %83 = vector.broadcast %cst_41 : f32 to vector<7x1xf32>
    %84 = arith.divf %82, %83 : vector<7x1xf32>
    %cst_42 = arith.constant 9.99999974E-6 : f32
    %85 = vector.broadcast %cst_42 : f32 to vector<7x1xf32>
    %86 = arith.addf %84, %85 : vector<7x1xf32>
    %87 = math.rsqrt %86 : vector<7x1xf32>
    %88 = vector.broadcast %87 : vector<7x1xf32> to vector<7x256xf32>
    %89 = arith.mulf %79, %88 : vector<7x256xf32>
    %c0_43 = arith.constant 0 : index
    %c0_44 = arith.constant 0 : index
    %90 = vector.load %arg11[%c0_43, %c0_44] : memref<1x256xf32, #tpu.memory_space<vmem>>, vector<1x256xf32>
    %91 = vector.broadcast %90 : vector<1x256xf32> to vector<7x256xf32>
    %92 = arith.mulf %89, %91 : vector<7x256xf32>
    %c0_45 = arith.constant 0 : index
    %c0_46 = arith.constant 0 : index
    %93 = vector.load %arg12[%c0_45, %c0_46] : memref<1x256xf32, #tpu.memory_space<vmem>>, vector<1x256xf32>
    %94 = vector.broadcast %93 : vector<1x256xf32> to vector<7x256xf32>
    %95 = arith.addf %92, %94 : vector<7x256xf32>
    %c0_47 = arith.constant 0 : index
    %c0_48 = arith.constant 0 : index
    %c0_49 = arith.constant 0 : index
    %96 = vector.load %arg13[%c0_47, %c0_48, %c0_49] : memref<1x7x256xf32, #tpu.memory_space<vmem>>, vector<1x7x256xf32>
    %97 = vector.shape_cast %96 : vector<1x7x256xf32> to vector<7x256xf32>
    %98 = vector.shape_cast %95 : vector<7x256xf32> to vector<1x7x256xf32>
    tpu.vector_store %arg13[%c0_47, %c0_48, %c0_49], %98 {strides = array<i32>} : memref<1x7x256xf32, #tpu.memory_space<vmem>>, vector<1x7x256xf32>,
    return
  }
  func.func @transform_0(%arg0: i32) -> (i32, i32, i32) {
    %c0_i32 = arith.constant 0 : i32
    %c0_i32_0 = arith.constant 0 : i32
    %c0_i32_1 = arith.constant 0 : i32
    return %arg0, %c0_i32, %c0_i32_0 : i32, i32, i32
  }
  func.func @transform_1(%arg0: i32) -> (i32, i32, i32) {
    %c0_i32 = arith.constant 0 : i32
    %c0_i32_0 = arith.constant 0 : i32
    %c0_i32_1 = arith.constant 0 : i32
    return %arg0, %c0_i32, %c0_i32_0 : i32, i32, i32
  }
  func.func @transform_2(%arg0: i32) -> (i32, i32) {
    %c0_i32 = arith.constant 0 : i32
    %c0_i32_0 = arith.constant 0 : i32
    %c0_i32_1 = arith.constant 0 : i32
    return %c0_i32, %c0_i32_0 : i32, i32
  }
  func.func @transform_3(%arg0: i32) -> (i32, i32) {
    %c0_i32 = arith.constant 0 : i32
    %c0_i32_0 = arith.constant 0 : i32
    %c0_i32_1 = arith.constant 0 : i32
    return %c0_i32, %c0_i32_0 : i32, i32
  }
  func.func @transform_4(%arg0: i32) -> (i32, i32) {
    %c0_i32 = arith.constant 0 : i32
    %c0_i32_0 = arith.constant 0 : i32
    %c0_i32_1 = arith.constant 0 : i32
    return %c0_i32, %c0_i32_0 : i32, i32
  }
  func.func @transform_5(%arg0: i32) -> (i32, i32) {
    %c0_i32 = arith.constant 0 : i32
    %c0_i32_0 = arith.constant 0 : i32
    %c0_i32_1 = arith.constant 0 : i32
    return %c0_i32, %c0_i32_0 : i32, i32
  }
  func.func @transform_6(%arg0: i32) -> (i32, i32) {
    %c0_i32 = arith.constant 0 : i32
    %c0_i32_0 = arith.constant 0 : i32
    %c0_i32_1 = arith.constant 0 : i32
    return %c0_i32, %c0_i32_0 : i32, i32
  }
  func.func @transform_7(%arg0: i32) -> (i32, i32) {
    %c0_i32 = arith.constant 0 : i32
    %c0_i32_0 = arith.constant 0 : i32
    %c0_i32_1 = arith.constant 0 : i32
    return %c0_i32, %c0_i32_0 : i32, i32
  }
  func.func @transform_8(%arg0: i32) -> (i32, i32) {
    %c0_i32 = arith.constant 0 : i32
    %c0_i32_0 = arith.constant 0 : i32
    %c0_i32_1 = arith.constant 0 : i32
    return %c0_i32, %c0_i32_0 : i32, i32
  }
  func.func @transform_9(%arg0: i32) -> (i32, i32) {
    %c0_i32 = arith.constant 0 : i32
    %c0_i32_0 = arith.constant 0 : i32
    %c0_i32_1 = arith.constant 0 : i32
    return %c0_i32, %c0_i32_0 : i32, i32
  }
  func.func @transform_10(%arg0: i32) -> (i32, i32) {
    %c0_i32 = arith.constant 0 : i32
    %c0_i32_0 = arith.constant 0 : i32
    %c0_i32_1 = arith.constant 0 : i32
    return %c0_i32, %c0_i32_0 : i32, i32
  }
  func.func @transform_11(%arg0: i32) -> (i32, i32) {
    %c0_i32 = arith.constant 0 : i32
    %c0_i32_0 = arith.constant 0 : i32
    %c0_i32_1 = arith.constant 0 : i32
    return %c0_i32, %c0_i32_0 : i32, i32
  }
  func.func @transform_12(%arg0: i32) -> (i32, i32, i32) {
    %c0_i32 = arith.constant 0 : i32
    %c0_i32_0 = arith.constant 0 : i32
    %c0_i32_1 = arith.constant 0 : i32
    return %arg0, %c0_i32, %c0_i32_0 : i32, i32, i32
  }
  func.func @transform_13(%arg0: i32) -> (i32, i32, i32) {
    %c0_i32 = arith.constant 0 : i32
    %c0_i32_0 = arith.constant 0 : i32
    %c0_i32_1 = arith.constant 0 : i32
    return %arg0, %c0_i32, %c0_i32_0 : i32, i32, i32
  }
}

module attributes {stable_mosaic.version = 11 : i64} {
  func.func @_ffn_block_kernel(%arg0: i32, %arg1: memref<8x256xf32, #tpu.memory_space<vmem>>, %arg2: memref<256x512xbf16, #tpu.memory_space<vmem>>, %arg3: memref<1x512xf32, #tpu.memory_space<vmem>>, %arg4: memref<512x256xbf16, #tpu.memory_space<vmem>>, %arg5: memref<1x256xf32, #tpu.memory_space<vmem>>, %arg6: memref<1x256xf32, #tpu.memory_space<vmem>>, %arg7: memref<1x256xf32, #tpu.memory_space<vmem>>, %arg8: memref<8x256xf32, #tpu.memory_space<vmem>>) attributes {dimension_semantics = [#tpu.dimension_semantics<parallel>], iteration_bounds = array<i64: 2>, scalar_prefetch = 0 : i64, scratch_operands = 0 : i64, tpu.core_type = #tpu.core_type<tc>, window_params = [{transform_indices = @transform_0, window_bounds = array<i64: 8, 256>}, {pipeline_mode = #tpu.pipeline_mode<synchronous>, transform_indices = @transform_1, window_bounds = array<i64: 256, 512>}, {pipeline_mode = #tpu.pipeline_mode<synchronous>, transform_indices = @transform_2, window_bounds = array<i64: 1, 512>}, {pipeline_mode = #tpu.pipeline_mode<synchronous>, transform_indices = @transform_3, window_bounds = array<i64: 512, 256>}, {pipeline_mode = #tpu.pipeline_mode<synchronous>, transform_indices = @transform_4, window_bounds = array<i64: 1, 256>}, {pipeline_mode = #tpu.pipeline_mode<synchronous>, transform_indices = @transform_5, window_bounds = array<i64: 1, 256>}, {pipeline_mode = #tpu.pipeline_mode<synchronous>, transform_indices = @transform_6, window_bounds = array<i64: 1, 256>}, {transform_indices = @transform_7, window_bounds = array<i64: 8, 256>}]} {
    %c0 = arith.constant 0 : index
    %c0_0 = arith.constant 0 : index
    %0 = vector.load %arg1[%c0, %c0_0] : memref<8x256xf32, #tpu.memory_space<vmem>>, vector<8x256xf32>
    %1 = arith.truncf %0 : vector<8x256xf32> to vector<8x256xbf16>
    %c0_1 = arith.constant 0 : index
    %c0_2 = arith.constant 0 : index
    %2 = vector.load %arg2[%c0_1, %c0_2] : memref<256x512xbf16, #tpu.memory_space<vmem>>, vector<256x512xbf16>
    %cst = arith.constant dense<0.000000e+00> : vector<8x512xf32>
    %3 = tpu.matmul %1, %2, %cst {dimension_numbers = #tpu.dot_dimension_numbers<[1], [0], [0], [1], [0, 0, 1, 1], [], []>} : vector<8x256xbf16>, vector<256x512xbf16>, vector<8x512xf32> -> vector<8x512xf32>
    %c0_3 = arith.constant 0 : index
    %c0_4 = arith.constant 0 : index
    %4 = vector.load %arg3[%c0_3, %c0_4] : memref<1x512xf32, #tpu.memory_space<vmem>>, vector<1x512xf32>
    %5 = vector.broadcast %4 : vector<1x512xf32> to vector<8x512xf32>
    %6 = arith.addf %3, %5 : vector<8x512xf32>
    %cst_5 = arith.constant 0.000000e+00 : f32
    %7 = vector.broadcast %cst_5 : f32 to vector<8x512xf32>
    %8 = arith.maximumf %6, %7 : vector<8x512xf32>
    %9 = arith.truncf %8 : vector<8x512xf32> to vector<8x512xbf16>
    %c0_6 = arith.constant 0 : index
    %c0_7 = arith.constant 0 : index
    %10 = vector.load %arg4[%c0_6, %c0_7] : memref<512x256xbf16, #tpu.memory_space<vmem>>, vector<512x256xbf16>
    %cst_8 = arith.constant dense<0.000000e+00> : vector<8x256xf32>
    %11 = tpu.matmul %9, %10, %cst_8 {dimension_numbers = #tpu.dot_dimension_numbers<[1], [0], [0], [1], [0, 0, 1, 1], [], []>} : vector<8x512xbf16>, vector<512x256xbf16>, vector<8x256xf32> -> vector<8x256xf32>
    %c0_9 = arith.constant 0 : index
    %c0_10 = arith.constant 0 : index
    %12 = vector.load %arg5[%c0_9, %c0_10] : memref<1x256xf32, #tpu.memory_space<vmem>>, vector<1x256xf32>
    %13 = vector.broadcast %12 : vector<1x256xf32> to vector<8x256xf32>
    %14 = arith.addf %11, %13 : vector<8x256xf32>
    %15 = arith.addf %14, %0 : vector<8x256xf32>
    %cst_11 = arith.constant dense<0.000000e+00> : vector<8xf32>
    %16 = vector.multi_reduction <add>, %15, %cst_11 [1] : vector<8x256xf32> to vector<8xf32>
    %17 = vector.shape_cast %16 : vector<8xf32> to vector<8x1xf32>
    %cst_12 = arith.constant 2.560000e+02 : f32
    %18 = vector.broadcast %cst_12 : f32 to vector<8x1xf32>
    %19 = arith.divf %17, %18 : vector<8x1xf32>
    %20 = vector.broadcast %19 : vector<8x1xf32> to vector<8x256xf32>
    %21 = arith.subf %15, %20 : vector<8x256xf32>
    %22 = arith.mulf %21, %21 : vector<8x256xf32>
    %cst_13 = arith.constant dense<0.000000e+00> : vector<8xf32>
    %23 = vector.multi_reduction <add>, %22, %cst_13 [1] : vector<8x256xf32> to vector<8xf32>
    %24 = vector.shape_cast %23 : vector<8xf32> to vector<8x1xf32>
    %cst_14 = arith.constant 2.560000e+02 : f32
    %25 = vector.broadcast %cst_14 : f32 to vector<8x1xf32>
    %26 = arith.divf %24, %25 : vector<8x1xf32>
    %cst_15 = arith.constant 9.99999974E-6 : f32
    %27 = vector.broadcast %cst_15 : f32 to vector<8x1xf32>
    %28 = arith.addf %26, %27 : vector<8x1xf32>
    %29 = math.rsqrt %28 : vector<8x1xf32>
    %30 = vector.broadcast %29 : vector<8x1xf32> to vector<8x256xf32>
    %31 = arith.mulf %21, %30 : vector<8x256xf32>
    %c0_16 = arith.constant 0 : index
    %c0_17 = arith.constant 0 : index
    %32 = vector.load %arg6[%c0_16, %c0_17] : memref<1x256xf32, #tpu.memory_space<vmem>>, vector<1x256xf32>
    %33 = vector.broadcast %32 : vector<1x256xf32> to vector<8x256xf32>
    %34 = arith.mulf %31, %33 : vector<8x256xf32>
    %c0_18 = arith.constant 0 : index
    %c0_19 = arith.constant 0 : index
    %35 = vector.load %arg7[%c0_18, %c0_19] : memref<1x256xf32, #tpu.memory_space<vmem>>, vector<1x256xf32>
    %36 = vector.broadcast %35 : vector<1x256xf32> to vector<8x256xf32>
    %37 = arith.addf %34, %36 : vector<8x256xf32>
    %c0_20 = arith.constant 0 : index
    %c0_21 = arith.constant 0 : index
    %38 = vector.load %arg8[%c0_20, %c0_21] : memref<8x256xf32, #tpu.memory_space<vmem>>, vector<8x256xf32>
    tpu.vector_store %arg8[%c0_20, %c0_21], %37 {strides = array<i32>} : memref<8x256xf32, #tpu.memory_space<vmem>>, vector<8x256xf32>,
    return
  }
  func.func @transform_0(%arg0: i32) -> (i32, i32) {
    %c0_i32 = arith.constant 0 : i32
    %c0_i32_0 = arith.constant 0 : i32
    return %arg0, %c0_i32 : i32, i32
  }
  func.func @transform_1(%arg0: i32) -> (i32, i32) {
    %c0_i32 = arith.constant 0 : i32
    %c0_i32_0 = arith.constant 0 : i32
    %c0_i32_1 = arith.constant 0 : i32
    return %c0_i32, %c0_i32_0 : i32, i32
  }
  func.func @transform_2(%arg0: i32) -> (i32, i32) {
    %c0_i32 = arith.constant 0 : i32
    %c0_i32_0 = arith.constant 0 : i32
    %c0_i32_1 = arith.constant 0 : i32
    return %c0_i32, %c0_i32_0 : i32, i32
  }
  func.func @transform_3(%arg0: i32) -> (i32, i32) {
    %c0_i32 = arith.constant 0 : i32
    %c0_i32_0 = arith.constant 0 : i32
    %c0_i32_1 = arith.constant 0 : i32
    return %c0_i32, %c0_i32_0 : i32, i32
  }
  func.func @transform_4(%arg0: i32) -> (i32, i32) {
    %c0_i32 = arith.constant 0 : i32
    %c0_i32_0 = arith.constant 0 : i32
    %c0_i32_1 = arith.constant 0 : i32
    return %c0_i32, %c0_i32_0 : i32, i32
  }
  func.func @transform_5(%arg0: i32) -> (i32, i32) {
    %c0_i32 = arith.constant 0 : i32
    %c0_i32_0 = arith.constant 0 : i32
    %c0_i32_1 = arith.constant 0 : i32
    return %c0_i32, %c0_i32_0 : i32, i32
  }
  func.func @transform_6(%arg0: i32) -> (i32, i32) {
    %c0_i32 = arith.constant 0 : i32
    %c0_i32_0 = arith.constant 0 : i32
    %c0_i32_1 = arith.constant 0 : i32
    return %c0_i32, %c0_i32_0 : i32, i32
  }
  func.func @transform_7(%arg0: i32) -> (i32, i32) {
    %c0_i32 = arith.constant 0 : i32
    %c0_i32_0 = arith.constant 0 : i32
    return %arg0, %c0_i32 : i32, i32
  }
}

</mosaic_0001>

<bundles_post_ra>
// kernel: transformer_decoder_layer_forward.3
= control target key start
LH: loop header
LB: loop body
LE: loop exit
PB: predicated region body
PF: predicated region fallthrough
CT: control target
= control target key end

     0   :  { %s1752_s24 = smov 0   ;;  %s2202_s0 = inlined_call_operand.vmem [shape: f32[16,256], index: 0, kind: input, shape index: {}]   ;;  %s2203_s1 = inlined_call_operand.vmem [shape: bf16[256,512], index: 1, kind: input, shape index: {}]   ;;  %s2204_s2 = inlined_call_operand.vmem [shape: f32[1,512], index: 2, kind: input, shape index: {}]   ;;  %s2205_s3 = inlined_call_operand.vmem [shape: bf16[512,256], index: 3, kind: input, shape index: {}]   ;;  %s2206_s4 = inlined_call_operand.vmem [shape: f32[1,256], index: 4, kind: input, shape index: {}]   ;;  %s2207_s5 = inlined_call_operand.vmem [shape: f32[1,256], index: 5, kind: input, shape index: {}]   ;;  %s2208_s6 = inlined_call_operand.vmem [shape: f32[1,256], index: 6, kind: input, shape index: {}]   ;;  %s2209_s7 = inlined_call_operand.vmem [shape: f32[16,256], index: 7, kind: output, shape index: {}]  }
   0x1 LB: > { %s1361_s25 = sadd.s32 4294967295, %s1710_s24   ;;  %p1365_p0 = scmp.ge.s32.totalorder %s1710_s24, 1  ;;  %s1710_s24 = sphi %s1752_s24, %s17_s24  }
   0x2   : > { %p237_p1 = scmp.lt.s32.totalorder %s1710_s24, 3 }
   0x4   : > { %p238_p2 = pnand %p1365_p0, %p237_p1 }
   0x5   : > { %v1510_v0 = vld [vmem:[%s2203_s1 + $0x4] ss:$16 sps:$4 sm:$0xff] (!%p238_p2)   ;;  %v1512_v1 = vld [vmem:[%s2203_s1 + $0xc] ss:$16 sps:$4 sm:$0xff] (!%p238_p2)   ;;  %v1514_v2 = vld [vmem:[%s2203_s1] ss:$16 sps:$4 sm:$0xff] (!%p238_p2)  }
   0x6   : > { %241 = sbr.rel (%p238_p2) target bundleno = 825 (0x339), region = 48  ;;  %689 = vmatprep.subr.bf16.mxu0 (!%p238_p2), %v1510_v0  ;;  %v1515_v3 = vld [vmem:[%s2203_s1 + $0x8] ss:$16 sps:$4 sm:$0xff] (!%p238_p2)   ;;  %730 = vmatprep.subr.bf16.mxu1 (!%p238_p2), %v1512_v1  ;;  %v1516_v4 = vld [vmem:[%s2203_s1 + $0x24] ss:$16 sps:$4 sm:$0xff] (!%p238_p2)   ;;  %p269_p3 = scmp.lt.s32.totalorder (!%p238_p2), %s1361_s25, 1 }
   0x7   : > { %690 = vmatpush1.bf16.msra.mxu0 (!%p238_p2), %v1514_v2  ;;  %731 = vmatpush1.bf16.msra.mxu1 (!%p238_p2), %v1515_v3  ;;  %v1518_v5 = vld [vmem:[%s2203_s1 + $0x2c] ss:$16 sps:$4 sm:$0xff] (!%p238_p2)   ;;  %v1520_v6 = vld [vmem:[%s2203_s1 + $0x20] ss:$16 sps:$4 sm:$0xff] (!%p238_p2)   ;;  %v1521_v7 = vld [vmem:[%s2203_s1 + $0x28] ss:$16 sps:$4 sm:$0xff] (!%p238_p2)  }
   0x8   : > { %691 = vmatprep.subr.bf16.mxu0 (!%p238_p2), %v1516_v4  ;;  %732 = vmatprep.subr.bf16.mxu1 (!%p238_p2), %v1518_v5  ;;  %v1522_v8 = vld [vmem:[%s2203_s1 + $0x44] ss:$16 sps:$4 sm:$0xff] (!%p238_p2)   ;;  %v1524_v9 = vld [vmem:[%s2203_s1 + $0x4c] ss:$16 sps:$4 sm:$0xff] (!%p238_p2)   ;;  %v1526_v10 = vld [vmem:[%s2203_s1 + $0x40] ss:$16 sps:$4 sm:$0xff] (!%p238_p2)  }
   0x9   : > { %v1527_v11 = vld [vmem:[%s2203_s1 + $0x48] ss:$16 sps:$4 sm:$0xff] (!%p238_p2)   ;;  %v1528_v12 = vld [vmem:[%s2203_s1 + $0x64] ss:$16 sps:$4 sm:$0xff] (!%p238_p2)   ;;  %v1530_v13 = vld [vmem:[%s2203_s1 + $0x6c] ss:$16 sps:$4 sm:$0xff] (!%p238_p2)  }
   0xa   : > { %v1532_v14 = vld [vmem:[%s2203_s1 + $0x60] ss:$16 sps:$4 sm:$0xff] (!%p238_p2)   ;;  %v1533_v15 = vld [vmem:[%s2203_s1 + $0x68] ss:$16 sps:$4 sm:$0xff] (!%p238_p2)   ;;  %v1534_v16 = vld [vmem:[%s2203_s1 + $0x84] ss:$16 sps:$4 sm:$0xff] (!%p238_p2)  }
   0xb   : > { %692 = vmatpush1.bf16.msra.mxu0 (!%p238_p2), %v1520_v6  ;;  %733 = vmatpush1.bf16.msra.mxu1 (!%p238_p2), %v1521_v7  ;;  %v1536_v17 = vld [vmem:[%s2203_s1 + $0x8c] ss:$16 sps:$4 sm:$0xff] (!%p238_p2)   ;;  %v1538_v18 = vld [vmem:[%s2203_s1 + $0x80] ss:$16 sps:$4 sm:$0xff] (!%p238_p2)   ;;  %v1539_v19 = vld [vmem:[%s2203_s1 + $0x88] ss:$16 sps:$4 sm:$0xff] (!%p238_p2)  }
   0xc   : > { %693 = vmatprep.subr.bf16.mxu0 (!%p238_p2), %v1522_v8  ;;  %734 = vmatprep.subr.bf16.mxu1 (!%p238_p2), %v1524_v9  ;;  %v1540_v20 = vld [vmem:[%s2203_s1 + $0xa4] ss:$16 sps:$4 sm:$0xff] (!%p238_p2)   ;;  %v1542_v21 = vld [vmem:[%s2203_s1 + $0xac] ss:$16 sps:$4 sm:$0xff] (!%p238_p2)   ;;  %v1544_v22 = vld [vmem:[%s2203_s1 + $0xa0] ss:$16 sps:$4 sm:$0xff] (!%p238_p2)  }
   0xd   : > { %v1545_v23 = vld [vmem:[%s2203_s1 + $0xa8] ss:$16 sps:$4 sm:$0xff]   ;;  %v1546_v24 = vld [vmem:[%s2203_s1 + $0xc4] ss:$16 sps:$4 sm:$0xff]   ;;  %v1548_v25 = vld [vmem:[%s2203_s1 + $0xcc] ss:$16 sps:$4 sm:$0xff]  }
   0xe   : > { %v1550_v26 = vld [vmem:[%s2203_s1 + $0xc0] ss:$16 sps:$4 sm:$0xff]   ;;  %v1551_v27 = vld [vmem:[%s2203_s1 + $0xc8] ss:$16 sps:$4 sm:$0xff]   ;;  %v1552_v28 = vld [vmem:[%s2203_s1 + $0xe4] ss:$16 sps:$4 sm:$0xff]  }
   0xf   : > { %694 = vmatpush1.bf16.msra.mxu0 %v1526_v10  ;;  %735 = vmatpush1.bf16.msra.mxu1 %v1527_v11  ;;  %v1554_v29 = vld [vmem:[%s2203_s1 + $0xec] ss:$16 sps:$4 sm:$0xff]   ;;  %v1556_v30 = vld [vmem:[%s2203_s1 + $0xe0] ss:$16 sps:$4 sm:$0xff]   ;;  %v1557_v31 = vld [vmem:[%s2203_s1 + $0xe8] ss:$16 sps:$4 sm:$0xff]  }
  0x10   : > { %695 = vmatprep.subr.bf16.mxu0 %v1528_v12  ;;  %736 = vmatprep.subr.bf16.mxu1 %v1530_v13  ;;  %v1558_v32 = vld [vmem:[%s2203_s1 + $0x104] ss:$16 sps:$4 sm:$0xff]   ;;  %v1560_v33 = vld [vmem:[%s2203_s1 + $0x10c] ss:$16 sps:$4 sm:$0xff]   ;;  %v1562_v34 = vld [vmem:[%s2203_s1 + $0x100] ss:$16 sps:$4 sm:$0xff]  }
  0x11   : > { %v1563_v35 = vld [vmem:[%s2203_s1 + $0x108] ss:$16 sps:$4 sm:$0xff]   ;;  %v1564_v36 = vld [vmem:[%s2203_s1 + $0x124] ss:$16 sps:$4 sm:$0xff]   ;;  %v1566_v37 = vld [vmem:[%s2203_s1 + $0x12c] ss:$16 sps:$4 sm:$0xff]  }
  0x12   : > { %s2211_s25 = smov (!%p269_p3, %s1361_s25), 1  ;;  %v1568_v38 = vld [vmem:[%s2203_s1 + $0x120] ss:$16 sps:$4 sm:$0xff]   ;;  %v1569_v39 = vld [vmem:[%s2203_s1 + $0x128] ss:$16 sps:$4 sm:$0xff]  }
  0x13   : > { %696 = vmatpush1.bf16.msra.mxu0 %v1532_v14  ;;  %737 = vmatpush1.bf16.msra.mxu1 %v1533_v15  ;;  %v1570_v40 = vld [vmem:[%s2203_s1 + $0x144] ss:$16 sps:$4 sm:$0xff]   ;;  %v1572_v41 = vld [vmem:[%s2203_s1 + $0x14c] ss:$16 sps:$4 sm:$0xff]   ;;  %s1500_s26 = sshll.u32 %s2211_s25, 4 }
  0x14   : > { %697 = vmatprep.subr.bf16.mxu0 %v1534_v16  ;;  %738 = vmatprep.subr.bf16.mxu1 %v1536_v17  ;;  %v1574_v42 = vld [vmem:[%s2203_s1 + $0x140] ss:$16 sps:$4 sm:$0xff]   ;;  %v1575_v43 = vld [vmem:[%s2203_s1 + $0x148] ss:$16 sps:$4 sm:$0xff]   ;;  %v1576_v44 = vld [vmem:[%s2203_s1 + $0x164] ss:$16 sps:$4 sm:$0xff]   ;;  %s1907_s12 = scalar_lea.vmem %s2202_s0, %s1500_s26  ;;  %s278_s10 = scalar_lea.vmem %s2209_s7, %s1500_s26 }
  0x15   : > { %v1578_v45 = vld [vmem:[%s2203_s1 + $0x16c] ss:$16 sps:$4 sm:$0xff]   ;;  %v1580_v47 = vld [vmem:[%s2203_s1 + $0x160] ss:$16 sps:$4 sm:$0xff]   ;;  %v1581_v48 = vld [vmem:[%s2203_s1 + $0x168] ss:$16 sps:$4 sm:$0xff]  }
  0x16   : > { %v1913_v46 = vld [vmem:[%s1907_s12 + $0x8] sm:$0xff]  ;;  %v1582_v50 = vld [vmem:[%s2203_s1 + $0x184] ss:$16 sps:$4 sm:$0xff]   ;;  %v1586_v52 = vld [vmem:[%s2203_s1 + $0x180] ss:$16 sps:$4 sm:$0xff]  }
  0x17   : > { %698 = vmatpush1.bf16.msra.mxu0 %v1538_v18  ;;  %739 = vmatpush1.bf16.msra.mxu1 %v1539_v19  ;;  %v282_v49 = vpack.c.bf16 %v1913_v46, %v1913_v46  ;;  %v1584_v51 = vld [vmem:[%s2203_s1 + $0x18c] ss:$16 sps:$4 sm:$0xff]   ;;  %v1587_v53 = vld [vmem:[%s2203_s1 + $0x188] ss:$16 sps:$4 sm:$0xff]   ;;  %v1588_v54 = vld [vmem:[%s2203_s1 + $0x1a4] ss:$16 sps:$4 sm:$0xff]  }
  0x18   : > { %699 = vmatprep.subr.bf16.mxu0 %v1540_v20  ;;  %740 = vmatprep.subr.bf16.mxu1 %v1542_v21  ;;  %v1590_v55 = vld [vmem:[%s2203_s1 + $0x1ac] ss:$16 sps:$4 sm:$0xff]   ;;  %v1592_v56 = vld [vmem:[%s2203_s1 + $0x1a0] ss:$16 sps:$4 sm:$0xff]   ;;  %v1593_v57 = vld [vmem:[%s2203_s1 + $0x1a8] ss:$16 sps:$4 sm:$0xff]  }
  0x19   : > { %721 = vmatprep.mubr.bf16.mxu0 %v282_v49  ;;  %762 = vmatprep.mubr.bf16.mxu1 %v282_v49  ;;  %v1594_v58 = vld [vmem:[%s2203_s1 + $0x1c4] ss:$16 sps:$4 sm:$0xff]   ;;  %v1596_v59 = vld [vmem:[%s2203_s1 + $0x1cc] ss:$16 sps:$4 sm:$0xff]   ;;  %v1598_v60 = vld [vmem:[%s2203_s1 + $0x1c0] ss:$16 sps:$4 sm:$0xff]  }
  0x1a   : > { %v1599_v61 = vld [vmem:[%s2203_s1 + $0x1c8] ss:$16 sps:$4 sm:$0xff]   ;;  %v1600_v62 = vld [vmem:[%s2203_s1 + $0x1e4] ss:$16 sps:$4 sm:$0xff]   ;;  %v1602_v63 = vld [vmem:[%s2203_s1 + $0x1ec] ss:$16 sps:$4 sm:$0xff]  }
  0x1b   : > { %700 = vmatpush1.bf16.msra.mxu0 %v1544_v22  ;;  %741 = vmatpush1.bf16.msra.mxu1 %v1545_v23  ;;  %v1604_v0 = vld [vmem:[%s2203_s1 + $0x1e0] ss:$16 sps:$4 sm:$0xff]   ;;  %v1605_v1 = vld [vmem:[%s2203_s1 + $0x1e8] ss:$16 sps:$4 sm:$0xff]   ;;  %v1608_v3 = vld [vmem:[%s2205_s3 + $0x4] ss:$8 sps:$4 sm:$0xff]  }
  0x1c   : > { %701 = vmatprep.subr.bf16.mxu0 %v1546_v24  ;;  %742 = vmatprep.subr.bf16.mxu1 %v1548_v25  ;;  %v1972_v2 = vld [vmem:[%s1907_s12] sm:$0xff]  ;;  %v1614_v8 = vld [vmem:[%s2205_s3 + $0x14] ss:$8 sps:$4 sm:$0xff]   ;;  %v1612_v10 = vld [vmem:[%s2205_s3 + $0x10] ss:$8 sps:$4 sm:$0xff]  }
  0x1d   : > { %v1611_v4 = vld [vmem:[%s2205_s3 + $0x104] ss:$8 sps:$4 sm:$0xff]   ;;  %v281_v5 = vpack.c.bf16 %v1972_v2, %v1972_v2  ;;  %v1606_v6 = vld [vmem:[%s2205_s3] ss:$8 sps:$4 sm:$0xff]   ;;  %v1617_v9 = vld [vmem:[%s2205_s3 + $0x114] ss:$8 sps:$4 sm:$0xff]  }
  0x1e   : > { %v1609_v7 = vld [vmem:[%s2205_s3 + $0x100] ss:$8 sps:$4 sm:$0xff]   ;;  %v1615_v11 = vld [vmem:[%s2205_s3 + $0x110] ss:$8 sps:$4 sm:$0xff]   ;;  %v1620_v12 = vld [vmem:[%s2205_s3 + $0x24] ss:$8 sps:$4 sm:$0xff]  }
  0x1f   : > { %702 = vmatpush1.bf16.msra.mxu0 %v1550_v26  ;;  %743 = vmatpush1.bf16.msra.mxu1 %v1551_v27  ;;  %v1623_v13 = vld [vmem:[%s2205_s3 + $0x124] ss:$8 sps:$4 sm:$0xff]   ;;  %v1618_v14 = vld [vmem:[%s2205_s3 + $0x20] ss:$8 sps:$4 sm:$0xff]   ;;  %v1626_v16 = vld [vmem:[%s2205_s3 + $0x34] ss:$8 sps:$4 sm:$0xff]  }
  0x20   : > { %703 = vmatprep.subr.bf16.mxu0 %v1552_v28  ;;  %744 = vmatprep.subr.bf16.mxu1 %v1554_v29  ;;  %v1621_v15 = vld [vmem:[%s2205_s3 + $0x120] ss:$8 sps:$4 sm:$0xff]   ;;  %v1629_v17 = vld [vmem:[%s2205_s3 + $0x134] ss:$8 sps:$4 sm:$0xff]   ;;  %v1624_v18 = vld [vmem:[%s2205_s3 + $0x30] ss:$8 sps:$4 sm:$0xff]  }
  0x21   : > { %v1627_v19 = vld [vmem:[%s2205_s3 + $0x130] ss:$8 sps:$4 sm:$0xff]   ;;  %v1632_v20 = vld [vmem:[%s2205_s3 + $0x44] ss:$8 sps:$4 sm:$0xff]   ;;  %v1630_v22 = vld [vmem:[%s2205_s3 + $0x40] ss:$8 sps:$4 sm:$0xff]  }
  0x22   : > { %v1635_v21 = vld [vmem:[%s2205_s3 + $0x144] ss:$8 sps:$4 sm:$0xff]   ;;  %v1633_v23 = vld [vmem:[%s2205_s3 + $0x140] ss:$8 sps:$4 sm:$0xff]   ;;  %v1638_v24 = vld [vmem:[%s2205_s3 + $0x54] ss:$8 sps:$4 sm:$0xff]  }
  0x23   : > { %704 = vmatpush1.bf16.msra.mxu0 %v1556_v30  ;;  %745 = vmatpush1.bf16.msra.mxu1 %v1557_v31  ;;  %v1641_v25 = vld [vmem:[%s2205_s3 + $0x154] ss:$8 sps:$4 sm:$0xff]   ;;  %v1636_v26 = vld [vmem:[%s2205_s3 + $0x50] ss:$8 sps:$4 sm:$0xff]   ;;  %v1644_v28 = vld [vmem:[%s2205_s3 + $0x64] ss:$8 sps:$4 sm:$0xff]  }
  0x24   : > { %705 = vmatprep.subr.bf16.mxu0 %v1558_v32  ;;  %746 = vmatprep.subr.bf16.mxu1 %v1560_v33  ;;  %v1639_v27 = vld [vmem:[%s2205_s3 + $0x150] ss:$8 sps:$4 sm:$0xff]   ;;  %v1647_v29 = vld [vmem:[%s2205_s3 + $0x164] ss:$8 sps:$4 sm:$0xff]   ;;  %v1642_v30 = vld [vmem:[%s2205_s3 + $0x60] ss:$8 sps:$4 sm:$0xff]  }
  0x25   : > { %v1645_v31 = vld [vmem:[%s2205_s3 + $0x160] ss:$8 sps:$4 sm:$0xff]   ;;  %v1650_v32 = vld [vmem:[%s2205_s3 + $0x74] ss:$8 sps:$4 sm:$0xff]  }
  0x26   : > { %v1653_v33 = vld [vmem:[%s2205_s3 + $0x174] ss:$8 sps:$4 sm:$0xff]  }
  0x27   : > { %706 = vmatpush1.bf16.msra.mxu0 %v1562_v34  ;;  %747 = vmatpush1.bf16.msra.mxu1 %v1563_v35  ;;  %v1648_v34 = vld [vmem:[%s2205_s3 + $0x70] ss:$8 sps:$4 sm:$0xff]   ;;  %v1674_v49 = vld [vmem:[%s2205_s3 + $0xb4] ss:$8 sps:$4 sm:$0xff]  }
  0x28   : > { %707 = vmatprep.subr.bf16.mxu0 %v1564_v36  ;;  %748 = vmatprep.subr.bf16.mxu1 %v1566_v37  ;;  %v1651_v35 = vld [vmem:[%s2205_s3 + $0x170] ss:$8 sps:$4 sm:$0xff]   ;;  %v1656_v36 = vld [vmem:[%s2205_s3 + $0x84] ss:$8 sps:$4 sm:$0xff]  }
  0x29   : > { %v1659_v37 = vld [vmem:[%s2205_s3 + $0x184] ss:$8 sps:$4 sm:$0xff]  }
  0x2b   : > { %708 = vmatpush1.bf16.msra.mxu0 %v1568_v38  ;;  %749 = vmatpush1.bf16.msra.mxu1 %v1569_v39  ;;  %v1654_v38 = vld [vmem:[%s2205_s3 + $0x80] ss:$8 sps:$4 sm:$0xff]  }
  0x2c   : > { %709 = vmatprep.subr.bf16.mxu0 %v1570_v40  ;;  %750 = vmatprep.subr.bf16.mxu1 %v1572_v41  ;;  %v1657_v39 = vld [vmem:[%s2205_s3 + $0x180] ss:$8 sps:$4 sm:$0xff]   ;;  %v1662_v40 = vld [vmem:[%s2205_s3 + $0x94] ss:$8 sps:$4 sm:$0xff]  }
  0x2d   : > { %v1665_v41 = vld [vmem:[%s2205_s3 + $0x194] ss:$8 sps:$4 sm:$0xff]  }
  0x2f   : > { %710 = vmatpush1.bf16.msra.mxu0 %v1574_v42  ;;  %751 = vmatpush1.bf16.msra.mxu1 %v1575_v43  ;;  %v1660_v42 = vld [vmem:[%s2205_s3 + $0x90] ss:$8 sps:$4 sm:$0xff]  }
  0x30   : > { %711 = vmatprep.subr.bf16.mxu0 %v1576_v44  ;;  %752 = vmatprep.subr.bf16.mxu1 %v1578_v45  ;;  %v1663_v43 = vld [vmem:[%s2205_s3 + $0x190] ss:$8 sps:$4 sm:$0xff]   ;;  %v1668_v44 = vld [vmem:[%s2205_s3 + $0xa4] ss:$8 sps:$4 sm:$0xff]  }
  0x31   : > { %v1671_v45 = vld [vmem:[%s2205_s3 + $0x1a4] ss:$8 sps:$4 sm:$0xff]  }
  0x33   : > { %712 = vmatpush1.bf16.msra.mxu0 %v1580_v47  ;;  %753 = vmatpush1.bf16.msra.mxu1 %v1581_v48  ;;  %v1666_v47 = vld [vmem:[%s2205_s3 + $0xa0] ss:$8 sps:$4 sm:$0xff]  }
  0x34   : > { %713 = vmatprep.subr.bf16.mxu0 %v1582_v50  ;;  %754 = vmatprep.subr.bf16.mxu1 %v1584_v51  ;;  %v1669_v48 = vld [vmem:[%s2205_s3 + $0x1a0] ss:$8 sps:$4 sm:$0xff]   ;;  %v1677_v50 = vld [vmem:[%s2205_s3 + $0x1b4] ss:$8 sps:$4 sm:$0xff]   ;;  %v1672_v51 = vld [vmem:[%s2205_s3 + $0xb0] ss:$8 sps:$4 sm:$0xff]  }
  0x37   : > { %714 = vmatpush1.bf16.msra.mxu0 %v1586_v52  ;;  %755 = vmatpush1.bf16.msra.mxu1 %v1587_v53  ;;  %v1675_v52 = vld [vmem:[%s2205_s3 + $0x1b0] ss:$8 sps:$4 sm:$0xff]   ;;  %v1680_v53 = vld [vmem:[%s2205_s3 + $0xc4] ss:$8 sps:$4 sm:$0xff]  }
  0x38   : > { %715 = vmatprep.subr.bf16.mxu0 %v1588_v54  ;;  %756 = vmatprep.subr.bf16.mxu1 %v1590_v55  ;;  %v1683_v54 = vld [vmem:[%s2205_s3 + $0x1c4] ss:$8 sps:$4 sm:$0xff]   ;;  %v1678_v55 = vld [vmem:[%s2205_s3 + $0xc0] ss:$8 sps:$4 sm:$0xff]  }
  0x3b   : > { %716 = vmatpush1.bf16.msra.mxu0 %v1592_v56  ;;  %757 = vmatpush1.bf16.msra.mxu1 %v1593_v57  ;;  %v1681_v56 = vld [vmem:[%s2205_s3 + $0x1c0] ss:$8 sps:$4 sm:$0xff]   ;;  %v1686_v57 = vld [vmem:[%s2205_s3 + $0xd4] ss:$8 sps:$4 sm:$0xff]  }
  0x3c   : > { %717 = vmatprep.subr.bf16.mxu0 %v1594_v58  ;;  %758 = vmatprep.subr.bf16.mxu1 %v1596_v59  ;;  %v1689_v58 = vld [vmem:[%s2205_s3 + $0x1d4] ss:$8 sps:$4 sm:$0xff]   ;;  %v1684_v59 = vld [vmem:[%s2205_s3 + $0xd0] ss:$8 sps:$4 sm:$0xff]  }
  0x3f   : > { %718 = vmatpush1.bf16.msra.mxu0 %v1598_v60  ;;  %759 = vmatpush1.bf16.msra.mxu1 %v1599_v61  ;;  %v1687_v60 = vld [vmem:[%s2205_s3 + $0x1d0] ss:$8 sps:$4 sm:$0xff]   ;;  %v1692_v61 = vld [vmem:[%s2205_s3 + $0xe4] ss:$8 sps:$4 sm:$0xff]  }
  0x40   : > { %719 = vmatprep.subr.bf16.mxu0 %v1600_v62  ;;  %760 = vmatprep.subr.bf16.mxu1 %v1602_v63  ;;  %v1695_v62 = vld [vmem:[%s2205_s3 + $0x1e4] ss:$8 sps:$4 sm:$0xff]   ;;  %v1690_v63 = vld [vmem:[%s2205_s3 + $0xe0] ss:$8 sps:$4 sm:$0xff]  }
  0x43   : > { %720 = vmatpush1.bf16.msra.mxu0 %v1604_v0  ;;  %761 = vmatpush1.bf16.msra.mxu1 %v1605_v1  ;;  %v1693_v0 = vld [vmem:[%s2205_s3 + $0x1e0] ss:$8 sps:$4 sm:$0xff]   ;;  %v1698_v1 = vld [vmem:[%s2205_s3 + $0xf4] ss:$8 sps:$4 sm:$0xff]  }
  0x44   : > { %1175 = vmatprep.subr.bf16.mxu0 %v1608_v3  ;;  %1216 = vmatprep.subr.bf16.mxu1 %v1611_v4  ;;  %v1701_v3 = vld [vmem:[%s2205_s3 + $0x1f4] ss:$8 sps:$4 sm:$0xff]   ;;  %v1696_v4 = vld [vmem:[%s2205_s3 + $0xf0] ss:$8 sps:$4 sm:$0xff]  }
  0x46   : > { %722 = vmatmul.mubr.bf16.vlgmr.msra.gmra.mrb[0].mxu0 %v281_v5  ;;  %763 = vmatmul.mubr.bf16.vlgmr.msra.gmra.mrb[0].mxu1 %v281_v5  ;;  %v1699_v5 = vld [vmem:[%s2205_s3 + $0x1f0] ss:$8 sps:$4 sm:$0xff]  }
  0x47   : > { %1176 = vmatpush1.bf16.msra.mxu0 %v1606_v6  ;;  %1217 = vmatpush1.bf16.msra.mxu1 %v1609_v7  ;;  %v349_v6 = vlaneseq }
  0x48   : > { %1177 = vmatprep.subr.bf16.mxu0 %v1614_v8  ;;  %1218 = vmatprep.subr.bf16.mxu1 %v1617_v9 }
  0x49   : > { %v350_v7 = vshrl.u32 %v349_v6, 7 }
  0x4b   : > { %1178 = vmatpush1.bf16.msra.mxu0 %v1612_v10  ;;  %1219 = vmatpush1.bf16.msra.mxu1 %v1615_v11  ;;  %v2168_v8 = vsub.s32 0, %v350_v7  ;;  %v359_v9 = vsub.s32 2, %v350_v7  ;;  %v347_v10 = vld [vmem:[%s2204_s2] sm:$0xf]  ;;  %v2173_v11 = vsub.s32 1, %v350_v7 }
  0x4c   : > { %1179 = vmatprep.subr.bf16.mxu0 %v1620_v12  ;;  %1220 = vmatprep.subr.bf16.mxu1 %v1623_v13  ;;  %v363_v12 = vsub.s32 3, %v350_v7 }
  0x4d   : > { %v352_v13 = vrot.slane %v347_v10, %v2168_v8 }
  0x4f   : > { %1180 = vmatpush1.bf16.msra.mxu0 %v1618_v14  ;;  %1221 = vmatpush1.bf16.msra.mxu1 %v1621_v15  ;;  %v360_v14 = vrot.slane %v347_v10, %v359_v9  ;;  %v356_v15 = vrot.slane %v347_v10, %v2173_v11 }
  0x50   : > { %1181 = vmatprep.subr.bf16.mxu0 %v1626_v16  ;;  %1222 = vmatprep.subr.bf16.mxu1 %v1629_v17  ;;  %v364_v16 = vrot.slane %v347_v10, %v363_v12 }
  0x53   : > { %1182 = vmatpush1.bf16.msra.mxu0 %v1624_v18  ;;  %1223 = vmatpush1.bf16.msra.mxu1 %v1627_v19 }
  0x54   : > { %1183 = vmatprep.subr.bf16.mxu0 %v1632_v20  ;;  %1224 = vmatprep.subr.bf16.mxu1 %v1635_v21 }
  0x57   : > { %1184 = vmatpush1.bf16.msra.mxu0 %v1630_v22  ;;  %1225 = vmatpush1.bf16.msra.mxu1 %v1633_v23 }
  0x58   : > { %1185 = vmatprep.subr.bf16.mxu0 %v1638_v24  ;;  %1226 = vmatprep.subr.bf16.mxu1 %v1641_v25 }
  0x5b   : > { %1186 = vmatpush1.bf16.msra.mxu0 %v1636_v26  ;;  %1227 = vmatpush1.bf16.msra.mxu1 %v1639_v27 }
  0x5c   : > { %1187 = vmatprep.subr.bf16.mxu0 %v1644_v28  ;;  %1228 = vmatprep.subr.bf16.mxu1 %v1647_v29 }
  0x5f   : > { %1188 = vmatpush1.bf16.msra.mxu0 %v1642_v30  ;;  %1229 = vmatpush1.bf16.msra.mxu1 %v1645_v31 }
  0x60   : > { %1189 = vmatprep.subr.bf16.mxu0 %v1650_v32  ;;  %1230 = vmatprep.subr.bf16.mxu1 %v1653_v33 }
  0x63   : > { %1190 = vmatpush1.bf16.msra.mxu0 %v1648_v34  ;;  %1231 = vmatpush1.bf16.msra.mxu1 %v1651_v35 }
  0x64   : > { %1191 = vmatprep.subr.bf16.mxu0 %v1656_v36  ;;  %1232 = vmatprep.subr.bf16.mxu1 %v1659_v37  ;;  %v843_v37 = vld [vmem:[%s2206_s4] sm:$0x3] }
  0x67   : > { %1192 = vmatpush1.bf16.msra.mxu0 %v1654_v38  ;;  %1233 = vmatpush1.bf16.msra.mxu1 %v1657_v39  ;;  %v848_v38 = vrot.slane %v843_v37, %v2168_v8  ;;  %v852_v39 = vrot.slane %v843_v37, %v2173_v11 }
  0x68   : > { %1193 = vmatprep.subr.bf16.mxu0 %v1662_v40  ;;  %1234 = vmatprep.subr.bf16.mxu1 %v1665_v41 }
  0x6b   : > { %1194 = vmatpush1.bf16.msra.mxu0 %v1660_v42  ;;  %1235 = vmatpush1.bf16.msra.mxu1 %v1663_v43 }
  0x6c   : > { %1195 = vmatprep.subr.bf16.mxu0 %v1668_v44  ;;  %1236 = vmatprep.subr.bf16.mxu1 %v1671_v45 }
  0x6f   : > { %1196 = vmatpush1.bf16.msra.mxu0 %v1666_v47  ;;  %1237 = vmatpush1.bf16.msra.mxu1 %v1669_v48 }
  0x70   : > { %1197 = vmatprep.subr.bf16.mxu0 %v1674_v49  ;;  %1238 = vmatprep.subr.bf16.mxu1 %v1677_v50 }
  0x73   : > { %1198 = vmatpush1.bf16.msra.mxu0 %v1672_v51  ;;  %1239 = vmatpush1.bf16.msra.mxu1 %v1675_v52 }
  0x74   : > { %1199 = vmatprep.subr.bf16.mxu0 %v1680_v53  ;;  %1240 = vmatprep.subr.bf16.mxu1 %v1683_v54 }
  0x77   : > { %1200 = vmatpush1.bf16.msra.mxu0 %v1678_v55  ;;  %1241 = vmatpush1.bf16.msra.mxu1 %v1681_v56 }
  0x78   : > { %1201 = vmatprep.subr.bf16.mxu0 %v1686_v57  ;;  %1242 = vmatprep.subr.bf16.mxu1 %v1689_v58 }
  0x7b   : > { %1202 = vmatpush1.bf16.msra.mxu0 %v1684_v59  ;;  %1243 = vmatpush1.bf16.msra.mxu1 %v1687_v60 }
  0x7c   : > { %1203 = vmatprep.subr.bf16.mxu0 %v1692_v61  ;;  %1244 = vmatprep.subr.bf16.mxu1 %v1695_v62 }
  0x7f   : > { %1204 = vmatpush1.bf16.msra.mxu0 %v1690_v63  ;;  %1245 = vmatpush1.bf16.msra.mxu1 %v1693_v0 }
  0x80   : > { %1205 = vmatprep.subr.bf16.mxu0 %v1698_v1  ;;  %1246 = vmatprep.subr.bf16.mxu1 %v1701_v3 }
  0x83   : > { %1206 = vmatpush1.bf16.msra.mxu0 %v1696_v4  ;;  %1247 = vmatpush1.bf16.msra.mxu1 %v1699_v5 }
 0x119   : > { %v723_v17 = vpop.f32.mrb[0].mxu0  ;;  %v764_v18 = vpop.f32.mrb[0].mxu1 }
 0x11a   : > { %v724_v19 = vadd.f32 %v723_v17, %v352_v13  ;;  %v765_v20 = vadd.f32 %v764_v18, %v360_v14  ;;  %v725_v21 = vpop.f32.mrb[1].mxu0  ;;  %v766_v22 = vpop.f32.mrb[1].mxu1 }
 0x11b   : > { %v726_v23 = vadd.f32 %v725_v21, %v356_v15  ;;  %v767_v24 = vadd.f32 %v766_v22, %v364_v16  ;;  %v727_v25 = vpop.f32.mrb[2].mxu0  ;;  %v768_v26 = vpop.f32.mrb[2].mxu1 }
 0x11c   : > { %v771_v27 = vmax.f32 %v724_v19, 0.0  ;;  %v773_v28 = vmax.f32 %v765_v20, 0.0  ;;  %v728_v29 = vpop.f32.mrb[3].mxu0  ;;  %v769_v30 = vpop.f32.mrb[3].mxu1 }
 0x11d   : > { %v772_v31 = vmax.f32 %v726_v23, 0.0  ;;  %v774_v32 = vmax.f32 %v767_v24, 0.0 }
 0x11e   : > { %v777_v33 = vpack.c.bf16 %v773_v28, %v773_v28  ;;  %v775_v36 = vpack.c.bf16 %v771_v27, %v771_v27 }
 0x11f   : > { %v776_v34 = vpack.c.bf16 %v772_v31, %v772_v31  ;;  %v778_v35 = vpack.c.bf16 %v774_v32, %v774_v32 }
 0x121   : > { %1207 = vmatprep.mubr.bf16.mxu0 %v776_v34  ;;  %1248 = vmatprep.mubr.bf16.mxu1 %v778_v35 }
 0x122   : > { %1208 = vmatmul.mubr.bf16.vlgmr.msra.gmra.mrb[4].mxu0 %v775_v36  ;;  %1249 = vmatmul.mubr.bf16.vlgmr.msra.gmra.mrb[4].mxu1 %v777_v33 }
 0x1f5   : > { %v1209_v40 = vpop.f32.mrb[4].mxu0  ;;  %v1250_v41 = vpop.f32.mrb[4].mxu1 }
 0x1f6   : > { %v1210_v42 = vadd.f32 %v1209_v40, %v848_v38  ;;  %v1211_v43 = vpop.f32.mrb[5].mxu0  ;;  %v1252_v44 = vpop.f32.mrb[5].mxu1 }
 0x1f7   : > { %v1212_v45 = vadd.f32 %v1211_v43, %v852_v39  ;;  %v1213_v47 = vpop.f32.mrb[6].mxu0  ;;  %v1254_v48 = vpop.f32.mrb[6].mxu1 }
 0x1f8   : > { %v1251_v49 = vadd.f32 %v1250_v41, %v1210_v42  ;;  %v1214_v50 = vpop.f32.mrb[7].mxu0  ;;  %v1255_v51 = vpop.f32.mrb[7].mxu1 }
 0x1f9   : > { %v1253_v52 = vadd.f32 %v1252_v44, %v1212_v45 }
 0x1fa   : > { %v1257_v53 = vadd.f32 %v1251_v49, %v1972_v2  ;;  %v1276_v2 = vld [vmem:[%s2207_s5] sm:$0x3] }
 0x1fb   : > { %v1258_v54 = vadd.f32 %v1253_v52, %v1913_v46  ;;  %v1290_v46 = vld [vmem:[%s2208_s6] sm:$0x3]  ;;  %v1281_v3 = vrot.slane %v1276_v2, %v2168_v8  ;;  %v1285_v4 = vrot.slane %v1276_v2, %v2173_v11 }
 0x1fc   : > { %v1295_v6 = vrot.slane %v1290_v46, %v2168_v8  ;;  %v1299_v7 = vrot.slane %v1290_v46, %v2173_v11 }
 0x1fd   : > { %v1259_v55 = vadd.f32 %v1258_v54, %v1257_v53 }
 0x1ff   : > { %1260 = vadd.xlane.f32.xlu0 %v1259_v55 }
 0x28c   : > { %v1261_v56 = vpop.xlane.xlu0 %1260 }
 0x28d   : > { %v1263_v57 = vmul.f32 0.00390625, %v1261_v56 }
 0x28f   : > { %v1264_v58 = vsub.f32 %v1257_v53, %v1263_v57  ;;  %v1265_v59 = vsub.f32 %v1258_v54, %v1263_v57 }
 0x291   : > { %v1266_v60 = vmul.f32 %v1264_v58, %v1264_v58  ;;  %v1267_v61 = vmul.f32 %v1265_v59, %v1265_v59 }
 0x293   : > { %v1268_v62 = vadd.f32 %v1267_v61, %v1266_v60 }
 0x295   : > { %1269 = vadd.xlane.f32.xlu0 %v1268_v62 }
 0x322   : > { %v1270_v63 = vpop.xlane.xlu0 %1269 }
 0x323   : > { %v1271_v0 = vmul.f32 0.00390625, %v1270_v63 }
 0x325   : > { %v1272_v1 = vadd.f32 1e-05, %v1271_v0 }
 0x327   : > { %1702 = vrsqrt.f32 %v1272_v1 }
 0x331   : > { %v1703_v5 = vpop.eup %1702 }
 0x332   : > { %v1274_v9 = vmul.f32 %v1703_v5, %v1264_v58  ;;  %v1275_v10 = vmul.f32 %v1703_v5, %v1265_v59 }
 0x334   : > { %v1288_v12 = vmul.f32 %v1281_v3, %v1274_v9  ;;  %v1289_v13 = vmul.f32 %v1285_v4, %v1275_v10 }
 0x336   : > { %v1302_v14 = vadd.f32 %v1295_v6, %v1288_v12  ;;  %v1303_v15 = vadd.f32 %v1299_v7, %v1289_v13 }
 0x338   : > { %1304 = vst [vmem:[%s278_s10] sm:$0xff] %v1302_v14  ;;  %1305 = vst [vmem:[%s278_s10 + $0x8] sm:$0xff] %v1303_v15 }
 0x339 PF: > { %s17_s24 = sadd.s32 1, %s1710_s24  }
 0x33a   : > { %p14_p4 = scmp.ge.s32.totalorder %s17_s24, 4  }
 0x33c   :  { %16 = sbr.rel (!%p14_p4) target bundleno = 1 (0x1), region = 78 }

// kernel: transformer_decoder_layer_forward.2
= control target key start
LH: loop header
LB: loop body
LE: loop exit
PB: predicated region body
PF: predicated region fallthrough
CT: control target
= control target key end

     0   :  { %s2830_s0 = inlined_call_operand.vmem [shape: f32[2,7,256], index: 0, kind: input, shape index: {}]   ;;  %s2831_s1 = inlined_call_operand.vmem [shape: f32[2,12,256], index: 1, kind: input, shape index: {}]   ;;  %s2832_s2 = inlined_call_operand.hbm [shape: bf16[256,256], index: 2, kind: input, shape index: {}]   ;;  %s2833_s3 = inlined_call_operand.vmem [shape: f32[1,256], index: 3, kind: input, shape index: {}]   ;;  %s2834_s4 = inlined_call_operand.hbm [shape: bf16[256,256], index: 4, kind: input, shape index: {}]   ;;  %s2835_s5 = inlined_call_operand.vmem [shape: f32[1,256], index: 5, kind: input, shape index: {}]   ;;  %s2836_s6 = inlined_call_operand.hbm [shape: bf16[256,256], index: 6, kind: input, shape index: {}]   ;;  %s2837_s7 = inlined_call_operand.vmem [shape: f32[1,256], index: 7, kind: input, shape index: {}]   ;;  %s2838_s8 = inlined_call_operand.hbm [shape: bf16[256,256], index: 8, kind: input, shape index: {}]   ;;  %s2839_s9 = inlined_call_operand.vmem [shape: f32[1,256], index: 9, kind: input, shape index: {}]   ;;  %s2840_s10 = inlined_call_operand.vmem [shape: f32[1,256], index: 10, kind: input, shape index: {}]   ;;  %s2841_s11 = inlined_call_operand.vmem [shape: f32[1,256], index: 11, kind: input, shape index: {}]   ;;  %s2842_s12 = inlined_call_operand.vmem [shape: f32[2,7,256], index: 12, kind: output, shape index: {0}]   ;;  %s2843_s13 = inlined_call_operand.vmem [shape: f32[2,7,12], index: 13, kind: output, shape index: {1}]  }
   0x1   :  { %2847 = sst [smem:[#allocation13_spill]] %s2841_s11 }
   0x2   :  { %2848 = sst [smem:[#allocation14_spill]] %s2842_s12 }
   0x3   :  { %19 = vsyncpa [#allocation3], 0 }
   0x4   :  { %20 = vsyncpa [#allocation5], 0 }
   0x5   :  { %21 = vsyncpa [#allocation8], 0  ;;  %s2584_s25 = smov 0  }
   0x6 LB: > { %2849 = sst [smem:[#allocation12_spill]] %s2504_s25  ;;  %s2590_s26 = sadd.s32 4294967295, %s2504_s25   ;;  %s2504_s25 = sphi %s2584_s25, %s27_s25  }
   0x7   : > { %p1934_p0 = scmp.ge.s32.totalorder %s2504_s25, 1  ;;  %p346_p1 = scmp.lt.s32.totalorder %s2504_s25, 3 }
   0x8   : > { %p2845_p2 = scmp.eq.s32.totalorder %s2590_s26, 0  ;;  %s2506_s28 = smov [#allocation4]  }
   0x9   : > { %p2595_p3 = pnand %p1934_p0, %p346_p1  ;;  %s374_s29 = sshll.u32 %s2506_s28, 4  ;;  %s2599_s29 = int_to_ptr.vmem [resolvable:$true] %s374_s29 }
   0xa   : > { %s2507_s30 = smov [#allocation2]   ;;  %s2508_s16 = smov [#allocation6]  }
   0xb   : > { %s2850_s27 = scalar_select %p2595_p3, 1, 0 }
   0xc   : > { %p2135_p4 = pneg %p2595_p3  ;;  %s358_s14 = sshll.u32 %s2507_s30, 4  ;;  %s2603_s14 = int_to_ptr.vmem [resolvable:$true] %s358_s14 }
   0xd   : > { %s390_s17 = sshll.u32 %s2508_s16, 4  ;;  %s2509_s18 = smov [#allocation7]   ;;  %s2611_s17 = int_to_ptr.vmem [resolvable:$true] %s390_s17 }
   0xe   : > { %p2607_p5 = pnand %p2845_p2, %p2135_p4  ;;  %s2613_s19 = sshll.u32 %s2509_s18, 4  ;;  %s407_s19 = int_to_ptr.vmem [resolvable:$true] %s2613_s19 }
   0xf   : > { %s2374_s22 = scalar_lea.hbm %s2834_s4, 4096 }
  0x10   : > { %p2375_p6 = scmp.ne.s32.totalorder %s2834_s4, %s2374_s22  ;;  %p2623_p7 = pneg %p2607_p5 }
  0x11   : > { %p2381_p10 = scmp.lt.u32.totalorder %s2374_s22, %s2834_s4 }
  0x12   : > { %p2377_p8 = pnand %p2623_p7, %p2375_p6 }
  0x14   : > { %p2378_p9 = pneg %p2377_p8 }
  0x16   : > { %p2383_p11 = pnand %p2381_p10, %p2378_p9 }
  0x18   : > { %2386 = shalt.err (!%p2383_p11)
}
  0x19   : > { %s2387_s18 = scalar_lea.vmem %s2599_s29, 4096  ;;  %p2395_p1 = scmp.lt.s32.totalorder %s2599_s29, %s2599_s29 }
  0x1a   : > { %p2388_p12 = scmp.ne.s32.totalorder %s2599_s29, %s2387_s18  ;;  %p2396_p4 = scmp.lt.s32.totalorder %s2387_s18, %s2387_s18 }
  0x1c   : > { %p2390_p13 = pnand %p2388_p12, %p2623_p7  ;;  %p2397_p6 = por %p2396_p4, %p2395_p1 }
  0x1e   : > { %p2391_p0 = pneg %p2390_p13 }
  0x20   : > { %p2398_p8 = pnand %p2397_p6, %p2391_p0 }
  0x22   : > { %2401 = shalt.err (!%p2398_p8)
}
  0x23   : > { %s2510_s20 = smov 128   ;;  %s2511_s21 = smov 8  }
  0x24   : > { %2141 = dma.hbm_to_vmem [thread:$0]  (!%p2607_p5), %s2834_s4, 4096, %s2599_s29, [#allocation5], %s2510_s20, %s2510_s20, %s2511_s21  }
  0x25   : > { %s2402_s16 = scalar_lea.hbm %s2832_s2, 4096 }
  0x26   : > { %p2403_p9 = scmp.ne.s32.totalorder %s2832_s2, %s2402_s16  ;;  %p2409_p12 = scmp.lt.u32.totalorder %s2402_s16, %s2832_s2 }
  0x28   : > { %p2405_p10 = pnand %p2403_p9, %p2623_p7 }
  0x2a   : > { %p2406_p11 = pneg %p2405_p10 }
  0x2c   : > { %p2411_p13 = pnand %p2409_p12, %p2406_p11 }
  0x2e   : > { %2414 = shalt.err (!%p2411_p13)
}
  0x2f   : > { %s2415_s29 = scalar_lea.vmem %s2603_s14, 4096  ;;  %p2423_p6 = scmp.lt.s32.totalorder %s2603_s14, %s2603_s14 }
  0x30   : > { %p2416_p0 = scmp.ne.s32.totalorder %s2603_s14, %s2415_s29  ;;  %p2424_p8 = scmp.lt.s32.totalorder %s2415_s29, %s2415_s29 }
  0x32   : > { %p2418_p1 = pnand %p2416_p0, %p2623_p7  ;;  %p2425_p9 = por %p2424_p8, %p2423_p6 }
  0x34   : > { %p2419_p4 = pneg %p2418_p1 }
  0x36   : > { %p2426_p10 = pnand %p2425_p9, %p2419_p4 }
  0x38   : > { %2429 = shalt.err (!%p2426_p10)
}
  0x39   : > { %2138 = dma.hbm_to_vmem [thread:$0]  (!%p2607_p5), %s2832_s2, 4096, %s2603_s14, [#allocation3], %s2510_s20, %s2510_s20, %s2511_s21  }
  0x3a   : > { %s2430_s23 = scalar_lea.hbm %s2836_s6, 4096 }
  0x3b   : > { %p2431_p11 = scmp.ne.s32.totalorder %s2836_s6, %s2430_s23  ;;  %p2437_p0 = scmp.lt.u32.totalorder %s2430_s23, %s2836_s6 }
  0x3d   : > { %p2433_p12 = pnand %p2431_p11, %p2623_p7 }
  0x3f   : > { %p2434_p13 = pneg %p2433_p12 }
  0x41   : > { %p2439_p1 = pnand %p2437_p0, %p2434_p13 }
  0x43   : > { %2442 = shalt.err (!%p2439_p1)
}
  0x44   : > { %s2443_s14 = scalar_lea.vmem %s2611_s17, 4096  ;;  %p2451_p9 = scmp.lt.s32.totalorder %s2611_s17, %s2611_s17 }
  0x45   : > { %p2444_p4 = scmp.ne.s32.totalorder %s2611_s17, %s2443_s14  ;;  %p2452_p10 = scmp.lt.s32.totalorder %s2443_s14, %s2443_s14 }
  0x47   : > { %p2446_p6 = pnand %p2444_p4, %p2623_p7  ;;  %p2453_p11 = por %p2452_p10, %p2451_p9 }
  0x49   : > { %p2447_p8 = pneg %p2446_p6 }
  0x4b   : > { %p2454_p12 = pnand %p2453_p11, %p2447_p8 }
  0x4d   : > { %2457 = shalt.err (!%p2454_p12)
}
  0x4e   : > { %2144 = dma.hbm_to_vmem [thread:$0]  (!%p2607_p5), %s2836_s6, 4096, %s2611_s17, [#allocation5], %s2510_s20, %s2510_s20, %s2511_s21  }
  0x4f   : > { %s2458_s22 = scalar_lea.hbm %s2838_s8, 4096 }
  0x50   : > { %p2459_p13 = scmp.ne.s32.totalorder %s2838_s8, %s2458_s22  ;;  %p2465_p4 = scmp.lt.u32.totalorder %s2458_s22, %s2838_s8 }
  0x52   : > { %p2461_p0 = pnand %p2459_p13, %p2623_p7 }
  0x54   : > { %p2462_p1 = pneg %p2461_p0 }
  0x56   : > { %p2467_p6 = pnand %p2465_p4, %p2462_p1 }
  0x58   : > { %2470 = shalt.err (!%p2467_p6)
}
  0x59   : > { %s2471_s18 = scalar_lea.vmem %s407_s19, 4096  ;;  %p2479_p11 = scmp.lt.s32.totalorder %s407_s19, %s407_s19 }
  0x5a   : > { %p2472_p8 = scmp.ne.s32.totalorder %s407_s19, %s2471_s18  ;;  %p2480_p12 = scmp.lt.s32.totalorder %s2471_s18, %s2471_s18 }
  0x5c   : > { %p2474_p9 = pnand %p2472_p8, %p2623_p7  ;;  %p2481_p2 = por %p2480_p12, %p2479_p11 }
  0x5e   : > { %p2475_p10 = pneg %p2474_p9 }
  0x60   : > { %p2482_p3 = pnand %p2481_p2, %p2475_p10 }
  0x62   : > { %2485 = shalt.err (!%p2482_p3)
}
  0x63   : > { %2147 = dma.hbm_to_vmem [thread:$0]  (!%p2607_p5), %s2838_s8, 4096, %s407_s19, [#allocation8], %s2510_s20, %s2510_s20, %s2511_s21  }
  0x64   : > { %p2853_p13 = scmp.ne.s32.totalorder %s2850_s27, 0 }
  0x65   : > { %p2854_p7 = scmp.eq.s32.totalorder (!%p2853_p13), %s2590_s26, 0 }
  0x66   : > { %447 = sbr.rel (%p2853_p13) target bundleno = 1689 (0x699), region = 68 }
  0x6d   : > { %2491 = dma.done.wait (%p2854_p7), [#allocation3], 4096   ;;  %p2855_p0 = pmov %p2854_p7 }
  0x6f   : > { %2493 = vsyncadd (%p2855_p0), [#allocation3], 4294963200  ;;  %p2856_p2 = pmov %p2855_p0 }
  0x70   : > { %p2857_p3 = pmov %p2855_p0 }
  0x71   : > { %2495 = dma.done.wait (%p2856_p2), [#allocation5], 8192  }
  0x72   : > { %2497 = vsyncadd (%p2857_p3), [#allocation5], 4294959104  ;;  %p2858_p1 = pmov %p2855_p0 }
  0x73   : > { %p2859_p5 = pmov %p2855_p0 }
  0x74   : > { %2499 = dma.done.wait (%p2858_p1), [#allocation8], 4096  }
  0x75   : > { %2501 = vsyncadd (%p2859_p5), [#allocation8], 4294963200  ;;  %v2172_v0 = vld [vmem:[#allocation4 + $0x4] ss:$8 sps:$4 sm:$0xff]   ;;  %v2174_v1 = vld [vmem:[#allocation4] ss:$8 sps:$4 sm:$0xff]  }
  0x76   : > { %991 = vmatprep.subr.bf16.mxu1 %v2172_v0  ;;  %v2175_v2 = vld [vmem:[#allocation4 + $0x14] ss:$8 sps:$4 sm:$0xff]   ;;  %v2177_v3 = vld [vmem:[#allocation2 + $0x4] ss:$8 sps:$4 sm:$0xff]   ;;  %v2179_v4 = vld [vmem:[#allocation4 + $0x10] ss:$8 sps:$4 sm:$0xff]  }
  0x77   : > { %992 = vmatpush1.bf16.msra.mxu1 %v2174_v1  ;;  %v2180_v5 = vld [vmem:[#allocation2] ss:$8 sps:$4 sm:$0xff]   ;;  %v2181_v6 = vld [vmem:[#allocation4 + $0x24] ss:$8 sps:$4 sm:$0xff]   ;;  %746 = vmatprep.subr.bf16.mxu0 %v2177_v3  ;;  %v2183_v7 = vld [vmem:[#allocation2 + $0x14] ss:$8 sps:$4 sm:$0xff]  }
  0x78   : > { %993 = vmatprep.subr.bf16.mxu1 %v2175_v2  ;;  %747 = vmatpush1.bf16.msra.mxu0 %v2180_v5  ;;  %v2186_v8 = vld [vmem:[#allocation2 + $0x10] ss:$8 sps:$4 sm:$0xff]   ;;  %v2185_v9 = vld [vmem:[#allocation4 + $0x20] ss:$8 sps:$4 sm:$0xff]   ;;  %v2187_v10 = vld [vmem:[#allocation4 + $0x34] ss:$8 sps:$4 sm:$0xff]  }
  0x79   : > { %748 = vmatprep.subr.bf16.mxu0 %v2183_v7  ;;  %v2189_v11 = vld [vmem:[#allocation2 + $0x24] ss:$8 sps:$4 sm:$0xff]   ;;  %v2192_v12 = vld [vmem:[#allocation2 + $0x20] ss:$8 sps:$4 sm:$0xff]   ;;  %v2191_v13 = vld [vmem:[#allocation4 + $0x30] ss:$8 sps:$4 sm:$0xff]  }
  0x7a   : > { %v2195_v14 = vld [vmem:[#allocation2 + $0x34] ss:$8 sps:$4 sm:$0xff]   ;;  %v2193_v15 = vld [vmem:[#allocation4 + $0x44] ss:$8 sps:$4 sm:$0xff]   ;;  %v2197_v16 = vld [vmem:[#allocation4 + $0x40] ss:$8 sps:$4 sm:$0xff]  }
  0x7b   : > { %994 = vmatpush1.bf16.msra.mxu1 %v2179_v4  ;;  %v2198_v17 = vld [vmem:[#allocation2 + $0x30] ss:$8 sps:$4 sm:$0xff]   ;;  %v2201_v18 = vld [vmem:[#allocation2 + $0x44] ss:$8 sps:$4 sm:$0xff]   ;;  %v2199_v19 = vld [vmem:[#allocation4 + $0x54] ss:$8 sps:$4 sm:$0xff]  }
  0x7c   : > { %995 = vmatprep.subr.bf16.mxu1 %v2181_v6  ;;  %749 = vmatpush1.bf16.msra.mxu0 %v2186_v8  ;;  %v2204_v20 = vld [vmem:[#allocation2 + $0x40] ss:$8 sps:$4 sm:$0xff]   ;;  %v2203_v21 = vld [vmem:[#allocation4 + $0x50] ss:$8 sps:$4 sm:$0xff]   ;;  %v2207_v22 = vld [vmem:[#allocation2 + $0x54] ss:$8 sps:$4 sm:$0xff]  }
  0x7d   : > { %750 = vmatprep.subr.bf16.mxu0 %v2189_v11  ;;  %v2205_v23 = vld [vmem:[#allocation4 + $0x64] ss:$8 sps:$4 sm:$0xff]   ;;  %v2209_v24 = vld [vmem:[#allocation4 + $0x60] ss:$8 sps:$4 sm:$0xff]   ;;  %v2210_v25 = vld [vmem:[#allocation2 + $0x50] ss:$8 sps:$4 sm:$0xff]  }
  0x7e   : > { %v2213_v26 = vld [vmem:[#allocation2 + $0x64] ss:$8 sps:$4 sm:$0xff]   ;;  %v2211_v27 = vld [vmem:[#allocation4 + $0x74] ss:$8 sps:$4 sm:$0xff]   ;;  %v2216_v28 = vld [vmem:[#allocation2 + $0x60] ss:$8 sps:$4 sm:$0xff]  }
  0x7f   : > { %996 = vmatpush1.bf16.msra.mxu1 %v2185_v9  ;;  %v2215_v29 = vld [vmem:[#allocation4 + $0x70] ss:$8 sps:$4 sm:$0xff]   ;;  %v2219_v30 = vld [vmem:[#allocation2 + $0x74] ss:$8 sps:$4 sm:$0xff]   ;;  %p512_p4 = scmp.lt.s32.totalorder %s2590_s26, 1  ;;  %vm2513_vm0 = vmmov 0  }
  0x80   : > { %997 = vmatprep.subr.bf16.mxu1 %v2187_v10  ;;  %751 = vmatpush1.bf16.msra.mxu0 %v2192_v12  ;;  %v2217_v31 = vld [vmem:[#allocation4 + $0x84] ss:$8 sps:$4 sm:$0xff]   ;;  %v2221_v32 = vld [vmem:[#allocation4 + $0x80] ss:$8 sps:$4 sm:$0xff]   ;;  %v2222_v33 = vld [vmem:[#allocation2 + $0x70] ss:$8 sps:$4 sm:$0xff]  }
  0x81   : > { %752 = vmatprep.subr.bf16.mxu0 %v2195_v14  ;;  %v2225_v34 = vld [vmem:[#allocation2 + $0x84] ss:$8 sps:$4 sm:$0xff]   ;;  %s2864_s26 = smov (!%p512_p4, %s2590_s26), 1  ;;  %v2223_v35 = vld [vmem:[#allocation4 + $0x94] ss:$8 sps:$4 sm:$0xff]   ;;  %vm1347_vm1 = vcmask 1045504  }
  0x82   : > { %v2228_v36 = vld [vmem:[#allocation2 + $0x80] ss:$8 sps:$4 sm:$0xff]   ;;  %v2227_v37 = vld [vmem:[#allocation4 + $0x90] ss:$8 sps:$4 sm:$0xff]   ;;  %v2231_v38 = vld [vmem:[#allocation2 + $0x94] ss:$8 sps:$4 sm:$0xff]  }
  0x83   : > { %998 = vmatpush1.bf16.msra.mxu1 %v2191_v13  ;;  %s2085_s27 = sshll.u32 %s2864_s26, 5  ;;  %v2229_v39 = vld [vmem:[#allocation4 + $0xa4] ss:$8 sps:$4 sm:$0xff]   ;;  %v2233_v40 = vld [vmem:[#allocation4 + $0xa0] ss:$8 sps:$4 sm:$0xff]   ;;  %s2084_s20 = sshll.u32 %s2864_s26, 4 }
  0x84   : > { %999 = vmatprep.subr.bf16.mxu1 %v2193_v15  ;;  %753 = vmatpush1.bf16.msra.mxu0 %v2198_v17  ;;  %v2234_v41 = vld [vmem:[#allocation2 + $0x90] ss:$8 sps:$4 sm:$0xff]   ;;  %s2743_s28 = scalar_lea.vmem %s2831_s1, %s2085_s27  ;;  %v2237_v42 = vld [vmem:[#allocation2 + $0xa4] ss:$8 sps:$4 sm:$0xff]   ;;  %v2235_v43 = vld [vmem:[#allocation4 + $0xb4] ss:$8 sps:$4 sm:$0xff]   ;;  %s2753_s11 = scalar_lea.vmem %s2830_s0, %s2084_s20 }
  0x85   : > { %754 = vmatprep.subr.bf16.mxu0 %v2201_v18  ;;  %v535_v44 = vld [vmem:[%s2743_s28 + $0x8] sm:$0xff]  ;;  %v537_v45 = vld [vmem:[%s2743_s28 + $0x18] sm:$0xf]  ;;  %v2243_v49 = vld [vmem:[#allocation2 + $0xb4] ss:$8 sps:$4 sm:$0xff]   ;;  %vm1329_vm2 = vcmask 96256  }
  0x86   : > { %v2240_v46 = vld [vmem:[#allocation2 + $0xa0] ss:$8 sps:$4 sm:$0xff]   ;;  %v541_v47 = vpack.c.bf16 %v537_v45, %v535_v44  ;;  %v2239_v48 = vld [vmem:[#allocation4 + $0xb0] ss:$8 sps:$4 sm:$0xff]   ;;  %v2241_v50 = vld [vmem:[#allocation4 + $0xc4] ss:$8 sps:$4 sm:$0xff]  }
  0x87   : > { %1000 = vmatpush1.bf16.msra.mxu1 %v2197_v16  ;;  %v2756_v51 = vld [vmem:[%s2753_s11 + $0x8] sm:$0x7f]  ;;  %v2246_v54 = vld [vmem:[#allocation2 + $0xb0] ss:$8 sps:$4 sm:$0xff]   ;;  %v2247_v56 = vld [vmem:[#allocation4 + $0xd4] ss:$8 sps:$4 sm:$0xff]  }
  0x88   : > { %1001 = vmatprep.subr.bf16.mxu1 %v2199_v19  ;;  %755 = vmatpush1.bf16.msra.mxu0 %v2204_v20  ;;  %v2245_v52 = vld [vmem:[#allocation4 + $0xc0] ss:$8 sps:$4 sm:$0xff]   ;;  %v539_v53 = vpack.c.bf16 %v2756_v51, %v2756_v51  ;;  %v2249_v55 = vld [vmem:[#allocation2 + $0xc4] ss:$8 sps:$4 sm:$0xff]   ;;  %v2251_v57 = vld [vmem:[#allocation4 + $0xd0] ss:$8 sps:$4 sm:$0xff]  }
  0x89   : > { %756 = vmatprep.subr.bf16.mxu0 %v2207_v22  ;;  %1023 = vmatprep.mubr.bf16.mxu1 %v541_v47  ;;  %v2252_v58 = vld [vmem:[#allocation2 + $0xc0] ss:$8 sps:$4 sm:$0xff]   ;;  %v2255_v59 = vld [vmem:[#allocation2 + $0xd4] ss:$8 sps:$4 sm:$0xff]   ;;  %v2253_v60 = vld [vmem:[#allocation4 + $0xe4] ss:$8 sps:$4 sm:$0xff]  }
  0x8a   : > { %778 = vmatprep.mubr.bf16.mxu0 %v539_v53  ;;  %v2257_v61 = vld [vmem:[#allocation4 + $0xe0] ss:$8 sps:$4 sm:$0xff]   ;;  %v2258_v62 = vld [vmem:[#allocation2 + $0xd0] ss:$8 sps:$4 sm:$0xff]   ;;  %v2261_v63 = vld [vmem:[#allocation2 + $0xe4] ss:$8 sps:$4 sm:$0xff]  }
  0x8b   : > { %1002 = vmatpush1.bf16.msra.mxu1 %v2203_v21  ;;  %v2259_v0 = vld [vmem:[#allocation4 + $0xf4] ss:$8 sps:$4 sm:$0xff]   ;;  %v2263_v1 = vld [vmem:[#allocation4 + $0xf0] ss:$8 sps:$4 sm:$0xff]   ;;  %v2264_v2 = vld [vmem:[#allocation2 + $0xe0] ss:$8 sps:$4 sm:$0xff]  }
  0x8c   : > { %1003 = vmatprep.subr.bf16.mxu1 %v2205_v23  ;;  %757 = vmatpush1.bf16.msra.mxu0 %v2210_v25  ;;  %v534_v3 = vld [vmem:[%s2743_s28] sm:$0xff]  ;;  %v536_v4 = vld [vmem:[%s2743_s28 + $0x10] sm:$0xf]  ;;  %v2265_v5 = vld [vmem:[#allocation2 + $0xf4] ss:$8 sps:$4 sm:$0xff]   ;;  %vm1343_vm3 = vcmask 97280  }
  0x8d   : > { %758 = vmatprep.subr.bf16.mxu0 %v2213_v26  ;;  %v2267_v6 = vld [vmem:[#allocation2 + $0xf0] ss:$8 sps:$4 sm:$0xff]   ;;  %v2762_v7 = vpack.c.bf16 %v536_v4, %v534_v3  ;;  %v2765_v8 = vld [vmem:[%s2753_s11] sm:$0x7f]  ;;  %v2273_v12 = vld [vmem:[#allocation6 + $0x14] ss:$8 sps:$4 sm:$0xff]  }
  0x8e   : > { %v2270_v9 = vld [vmem:[#allocation6 + $0x4] ss:$8 sps:$4 sm:$0xff]   ;;  %v538_v10 = vpack.c.bf16 %v2765_v8, %v2765_v8  ;;  %v2268_v11 = vld [vmem:[#allocation6] ss:$8 sps:$4 sm:$0xff]   ;;  %v2271_v13 = vld [vmem:[#allocation6 + $0x10] ss:$8 sps:$4 sm:$0xff]  }
  0x8f   : > { %1004 = vmatpush1.bf16.msra.mxu1 %v2209_v24  ;;  %v2276_v14 = vld [vmem:[#allocation6 + $0x24] ss:$8 sps:$4 sm:$0xff]   ;;  %v2274_v15 = vld [vmem:[#allocation6 + $0x20] ss:$8 sps:$4 sm:$0xff]   ;;  %v2279_v16 = vld [vmem:[#allocation6 + $0x34] ss:$8 sps:$4 sm:$0xff]  }
  0x90   : > { %1005 = vmatprep.subr.bf16.mxu1 %v2211_v27  ;;  %759 = vmatpush1.bf16.msra.mxu0 %v2216_v28  ;;  %v2277_v17 = vld [vmem:[#allocation6 + $0x30] ss:$8 sps:$4 sm:$0xff]   ;;  %v2282_v18 = vld [vmem:[#allocation6 + $0x44] ss:$8 sps:$4 sm:$0xff]   ;;  %v2280_v19 = vld [vmem:[#allocation6 + $0x40] ss:$8 sps:$4 sm:$0xff]  }
  0x91   : > { %760 = vmatprep.subr.bf16.mxu0 %v2219_v30  ;;  %v2285_v20 = vld [vmem:[#allocation6 + $0x54] ss:$8 sps:$4 sm:$0xff]   ;;  %v2283_v21 = vld [vmem:[#allocation6 + $0x50] ss:$8 sps:$4 sm:$0xff]   ;;  %v2288_v22 = vld [vmem:[#allocation6 + $0x64] ss:$8 sps:$4 sm:$0xff]  }
  0x92   : > { %v2286_v23 = vld [vmem:[#allocation6 + $0x60] ss:$8 sps:$4 sm:$0xff]   ;;  %v2291_v24 = vld [vmem:[#allocation6 + $0x74] ss:$8 sps:$4 sm:$0xff]   ;;  %v2289_v25 = vld [vmem:[#allocation6 + $0x70] ss:$8 sps:$4 sm:$0xff]  }
  0x93   : > { %1006 = vmatpush1.bf16.msra.mxu1 %v2215_v29  ;;  %v2294_v26 = vld [vmem:[#allocation6 + $0x84] ss:$8 sps:$4 sm:$0xff]   ;;  %v2292_v27 = vld [vmem:[#allocation6 + $0x80] ss:$8 sps:$4 sm:$0xff]   ;;  %v2297_v28 = vld [vmem:[#allocation6 + $0x94] ss:$8 sps:$4 sm:$0xff]  }
  0x94   : > { %1007 = vmatprep.subr.bf16.mxu1 %v2217_v31  ;;  %761 = vmatpush1.bf16.msra.mxu0 %v2222_v33  ;;  %v2295_v29 = vld [vmem:[#allocation6 + $0x90] ss:$8 sps:$4 sm:$0xff]   ;;  %v2300_v30 = vld [vmem:[#allocation6 + $0xa4] ss:$8 sps:$4 sm:$0xff]   ;;  %v2298_v31 = vld [vmem:[#allocation6 + $0xa0] ss:$8 sps:$4 sm:$0xff]  }
  0x95   : > { %762 = vmatprep.subr.bf16.mxu0 %v2225_v34  ;;  %v2301_v33 = vld [vmem:[#allocation6 + $0xb0] ss:$8 sps:$4 sm:$0xff]   ;;  %v2306_v34 = vld [vmem:[#allocation6 + $0xc4] ss:$8 sps:$4 sm:$0xff]   ;;  %s1951_s16 = sshll.u32 %s2864_s26, 3  ;;  %vm1741_vm4 = vcmask 1046528  }
  0x96   : > { %s530_s14 = scalar_lea.vmem %s2843_s13, %s1951_s16  ;;  %s2860_s11 = sld [smem:[#allocation13_spill]] }
  0x97   : > { %1008 = vmatpush1.bf16.msra.mxu1 %v2221_v32  ;;  %v2303_v32 = vld [vmem:[#allocation6 + $0xb4] ss:$8 sps:$4 sm:$0xff]   ;;  %s2861_s22 = sld [smem:[#allocation14_spill]] }
  0x98   : > { %1009 = vmatprep.subr.bf16.mxu1 %v2223_v35  ;;  %763 = vmatpush1.bf16.msra.mxu0 %v2228_v36  ;;  %v2304_v35 = vld [vmem:[#allocation6 + $0xc0] ss:$8 sps:$4 sm:$0xff]   ;;  %v2309_v36 = vld [vmem:[#allocation6 + $0xd4] ss:$8 sps:$4 sm:$0xff]  }
  0x99   : > { %764 = vmatprep.subr.bf16.mxu0 %v2231_v38  ;;  %v2312_v38 = vld [vmem:[#allocation6 + $0xe4] ss:$8 sps:$4 sm:$0xff]  }
  0x9b   : > { %1010 = vmatpush1.bf16.msra.mxu1 %v2227_v37  ;;  %v2307_v37 = vld [vmem:[#allocation6 + $0xd0] ss:$8 sps:$4 sm:$0xff]  }
  0x9c   : > { %1011 = vmatprep.subr.bf16.mxu1 %v2229_v39  ;;  %765 = vmatpush1.bf16.msra.mxu0 %v2234_v41  ;;  %v2310_v39 = vld [vmem:[#allocation6 + $0xe0] ss:$8 sps:$4 sm:$0xff]   ;;  %v2313_v41 = vld [vmem:[#allocation6 + $0xf0] ss:$8 sps:$4 sm:$0xff]  }
  0x9d   : > { %766 = vmatprep.subr.bf16.mxu0 %v2237_v42  ;;  %v2512_v42 = vmov 0.0   ;;  %s526_s23 = scalar_lea.vmem %s2861_s22, %s2084_s20 }
  0x9f   : > { %1012 = vmatpush1.bf16.msra.mxu1 %v2233_v40  ;;  %v2315_v40 = vld [vmem:[#allocation6 + $0xf4] ss:$8 sps:$4 sm:$0xff]  }
  0xa0   : > { %1013 = vmatprep.subr.bf16.mxu1 %v2235_v43  ;;  %767 = vmatpush1.bf16.msra.mxu0 %v2240_v46  ;;  %v576_v43 = vlaneseq  ;;  %v819_v46 = vld [vmem:[%s2835_s5] sm:$0x3] }
  0xa1   : > { %768 = vmatprep.subr.bf16.mxu0 %v2243_v49 }
  0xa2   : > { %v577_v44 = vshrl.u32 %v576_v43, 7 }
  0xa3   : > { %1014 = vmatpush1.bf16.msra.mxu1 %v2239_v48  ;;  %v574_v48 = vld [vmem:[%s2833_s3] sm:$0x3] }
  0xa4   : > { %1015 = vmatprep.subr.bf16.mxu1 %v2241_v50  ;;  %769 = vmatpush1.bf16.msra.mxu0 %v2246_v54  ;;  %v2773_v45 = vsub.s32 0, %v577_v44 }
  0xa5   : > { %770 = vmatprep.subr.bf16.mxu0 %v2249_v55 }
  0xa6   : > { %v824_v49 = vrot.slane %v819_v46, %v2773_v45  ;;  %v579_v53 = vrot.slane %v574_v48, %v2773_v45 }
  0xa7   : > { %1016 = vmatpush1.bf16.msra.mxu1 %v2245_v52 }
  0xa8   : > { %1017 = vmatprep.subr.bf16.mxu1 %v2247_v56  ;;  %771 = vmatpush1.bf16.msra.mxu0 %v2252_v58 }
  0xa9   : > { %772 = vmatprep.subr.bf16.mxu0 %v2255_v59 }
  0xab   : > { %1018 = vmatpush1.bf16.msra.mxu1 %v2251_v57 }
  0xac   : > { %1019 = vmatprep.subr.bf16.mxu1 %v2253_v60  ;;  %773 = vmatpush1.bf16.msra.mxu0 %v2258_v62 }
  0xad   : > { %774 = vmatprep.subr.bf16.mxu0 %v2261_v63 }
  0xaf   : > { %1020 = vmatpush1.bf16.msra.mxu1 %v2257_v61 }
  0xb0   : > { %1021 = vmatprep.subr.bf16.mxu1 %v2259_v0  ;;  %775 = vmatpush1.bf16.msra.mxu0 %v2264_v2 }
  0xb1   : > { %776 = vmatprep.subr.bf16.mxu0 %v2265_v5 }
  0xb3   : > { %1022 = vmatpush1.bf16.msra.mxu1 %v2263_v1 }
  0xb4   : > { %777 = vmatpush1.bf16.msra.mxu0 %v2267_v6  ;;  %2107 = vmatprep.subr.bf16.mxu1 %v2512_v42 }
  0xb5   : > { %1238 = vmatprep.subr.bf16.mxu0 %v2270_v9 }
  0xb6   : > { %1024 = vmatmul.mubr.bf16.vlgmr.msra.gmra.mrb[0].mxu1 %v2762_v7 }
  0xb7   : > { %779 = vmatmul.mubr.bf16.vlgmr.msra.gmra.mrb[0].mxu0 %v538_v10  ;;  %2109 = vmatprep.mubr.msk.bf16.mxu1 %vm2513_vm0, %v2512_v42 }
  0xb8   : > { %1239 = vmatpush1.bf16.msra.mxu0 %v2268_v11  ;;  %1270 = vmatprep.mubr.bf16.mxu0 %v541_v47  ;;  %v2778_v47 = vsub.s32 1, %v577_v44  ;;  %v1066_v11 = vld [vmem:[%s2837_s7] sm:$0x3] }
  0xb9   : > { %1240 = vmatprep.subr.bf16.mxu0 %v2273_v12  ;;  %v1071_v12 = vrot.slane %v1066_v11, %v2773_v45 }
  0xba   : > { %v828_v52 = vrot.slane %v819_v46, %v2778_v47  ;;  %v583_v55 = vrot.slane %v574_v48, %v2778_v47  ;;  %v2318_v48 = vld [vmem:[#allocation7 + $0x4] ss:$8 sps:$4 sm:$0xff]  }
  0xbc   : > { %1241 = vmatpush1.bf16.msra.mxu0 %v2271_v13  ;;  %v1075_v13 = vrot.slane %v1066_v11, %v2778_v47  ;;  %v2337_v11 = vld [vmem:[#allocation7 + $0x70] ss:$8 sps:$4 sm:$0xff]  }
  0xbd   : > { %1242 = vmatprep.subr.bf16.mxu0 %v2276_v14 }
  0xc0   : > { %1243 = vmatpush1.bf16.msra.mxu0 %v2274_v15 }
  0xc1   : > { %1244 = vmatprep.subr.bf16.mxu0 %v2279_v16 }
  0xc4   : > { %1245 = vmatpush1.bf16.msra.mxu0 %v2277_v17 }
  0xc5   : > { %1246 = vmatprep.subr.bf16.mxu0 %v2282_v18 }
  0xc8   : > { %1247 = vmatpush1.bf16.msra.mxu0 %v2280_v19 }
  0xc9   : > { %1248 = vmatprep.subr.bf16.mxu0 %v2285_v20 }
  0xcc   : > { %1249 = vmatpush1.bf16.msra.mxu0 %v2283_v21 }
  0xcd   : > { %1250 = vmatprep.subr.bf16.mxu0 %v2288_v22 }
  0xd0   : > { %1251 = vmatpush1.bf16.msra.mxu0 %v2286_v23 }
  0xd1   : > { %1252 = vmatprep.subr.bf16.mxu0 %v2291_v24 }
  0xd4   : > { %1253 = vmatpush1.bf16.msra.mxu0 %v2289_v25 }
  0xd5   : > { %1254 = vmatprep.subr.bf16.mxu0 %v2294_v26 }
  0xd8   : > { %1255 = vmatpush1.bf16.msra.mxu0 %v2292_v27 }
  0xd9   : > { %1256 = vmatprep.subr.bf16.mxu0 %v2297_v28 }
  0xdc   : > { %1257 = vmatpush1.bf16.msra.mxu0 %v2295_v29 }
  0xdd   : > { %1258 = vmatprep.subr.bf16.mxu0 %v2300_v30 }
  0xe0   : > { %1259 = vmatpush1.bf16.msra.mxu0 %v2298_v31 }
  0xe1   : > { %1260 = vmatprep.subr.bf16.mxu0 %v2303_v32 }
  0xe4   : > { %1261 = vmatpush1.bf16.msra.mxu0 %v2301_v33 }
  0xe5   : > { %1262 = vmatprep.subr.bf16.mxu0 %v2306_v34 }
  0xe8   : > { %1263 = vmatpush1.bf16.msra.mxu0 %v2304_v35 }
  0xe9   : > { %1264 = vmatprep.subr.bf16.mxu0 %v2309_v36 }
  0xec   : > { %1265 = vmatpush1.bf16.msra.mxu0 %v2307_v37 }
  0xed   : > { %1266 = vmatprep.subr.bf16.mxu0 %v2312_v38 }
  0xf0   : > { %1267 = vmatpush1.bf16.msra.mxu0 %v2310_v39 }
  0xf1   : > { %1268 = vmatprep.subr.bf16.mxu0 %v2315_v40 }
  0xf4   : > { %1269 = vmatpush1.bf16.msra.mxu0 %v2313_v41 }
  0xf5   : > { %2095 = vmatprep.subr.bf16.mxu0 %v2512_v42 }
  0xf7   : > { %1271 = vmatmul.mubr.bf16.vlgmr.msra.gmra.mrb[4].mxu0 %v2762_v7 }
  0xf8   : > { %2097 = vmatprep.mubr.msk.bf16.mxu0 %vm2513_vm0, %v2512_v42 }
 0x189   : > { %v1025_v50 = vpop.f32.mrb[0].mxu1 }
 0x18a   : > { %v1027_v54 = vpop.f32.mrb[1].mxu1  ;;  %v1026_v57 = vadd.f32 %v1025_v50, %v824_v49  ;;  %v780_v60 = vpop.f32.mrb[0].mxu0 }
 0x18b   : > { %v1029_v56 = vpop.f32.mrb[2].mxu1  ;;  %v1028_v61 = vadd.f32 %v1027_v54, %v828_v52  ;;  %v781_v63 = vadd.f32 %v780_v60, %v579_v53  ;;  %v782_v0 = vpop.f32.mrb[1].mxu0  ;;  %v2316_v54 = vld [vmem:[#allocation7] ss:$8 sps:$4 sm:$0xff]  }
 0x18c   : > { %v1030_v58 = vadd.f32 %v1029_v56, %v824_v49  ;;  %v1031_v59 = vpop.f32.mrb[3].mxu1  ;;  %v783_v2 = vadd.f32 %v782_v0, %v583_v55  ;;  %v784_v3 = vpop.f32.mrb[2].mxu0  ;;  %v2321_v56 = vld [vmem:[#allocation7 + $0x14] ss:$8 sps:$4 sm:$0xff]   ;;  %v2322_v0 = vld [vmem:[#allocation7 + $0x20] ss:$8 sps:$4 sm:$0xff]  }
 0x18d   : > { %v1032_v62 = vadd.f32 %v1031_v59, %v828_v52  ;;  %v1281_v5 = vmul.f32 0.088388346, %v781_v63  ;;  %v785_v6 = vpop.f32.mrb[3].mxu0  ;;  %v2319_v59 = vld [vmem:[#allocation7 + $0x10] ss:$8 sps:$4 sm:$0xff]  }
 0x18e   : > { %v1285_v1 = vpack.c.bf16 %v1030_v58, %v1026_v57  ;;  %v1282_v7 = vmul.f32 0.088388346, %v783_v2  ;;  %v2325_v2 = vld [vmem:[#allocation7 + $0x30] ss:$8 sps:$4 sm:$0xff]   ;;  %v2330_v3 = vld [vmem:[#allocation7 + $0x44] ss:$8 sps:$4 sm:$0xff]  }
 0x18f   : > { %v1286_v4 = vpack.c.bf16 %v1032_v62, %v1028_v61  ;;  %v1283_v9 = vpack.c.bf16 %v1281_v5, %v1281_v5  ;;  %v2324_v62 = vld [vmem:[#allocation7 + $0x24] ss:$8 sps:$4 sm:$0xff]   ;;  %v2333_v5 = vld [vmem:[#allocation7 + $0x54] ss:$8 sps:$4 sm:$0xff]   ;;  %v2331_v6 = vld [vmem:[#allocation7 + $0x50] ss:$8 sps:$4 sm:$0xff]  }
 0x190   : > { %2096 = vmatpush3.bf16.xpose.msra.mxu0 %v1285_v1  ;;  %v1284_v10 = vpack.c.bf16 %v1282_v7, %v1282_v7  ;;  %v2327_v1 = vld [vmem:[#allocation7 + $0x34] ss:$8 sps:$4 sm:$0xff]   ;;  %v2336_v7 = vld [vmem:[#allocation7 + $0x64] ss:$8 sps:$4 sm:$0xff]  }
 0x191   : > { %2108 = vmatpush3.bf16.xpose.msra.mxu1 %v1286_v4  ;;  %2101 = vmatprep.subr.bf16.mxu0 %v2512_v42  ;;  %v2328_v4 = vld [vmem:[#allocation7 + $0x40] ss:$8 sps:$4 sm:$0xff]  }
 0x192   : > { %2113 = vmatprep.subr.bf16.mxu1 %v2512_v42 }
 0x197   : > { %2098 = vmatmul.mubr.bf16.vlgmr.msra.gmra.mrb[8].mxu0 %v1283_v9  ;;  %v2334_v9 = vld [vmem:[#allocation7 + $0x60] ss:$8 sps:$4 sm:$0xff]  }
 0x198   : > { %2110 = vmatmul.mubr.bf16.vlgmr.msra.gmra.mrb[4].mxu1 %v1284_v10  ;;  %2103 = vmatprep.mubr.msk.bf16.mxu0 %vm2513_vm0, %v2512_v42  ;;  %v2339_v10 = vld [vmem:[#allocation7 + $0x74] ss:$8 sps:$4 sm:$0xff]  }
 0x199   : > { %2115 = vmatprep.mubr.msk.bf16.mxu1 %vm2513_vm0, %v2512_v42 }
 0x1ca   : > { %v1272_v14 = vpop.f32.mrb[4].mxu0 }
 0x1cb   : > { %v1273_v15 = vadd.f32 %v1272_v14, %v1071_v12  ;;  %v1274_v16 = vpop.f32.mrb[5].mxu0  ;;  %v2345_v14 = vld [vmem:[#allocation7 + $0x94] ss:$8 sps:$4 sm:$0xff]  }
 0x1cc   : > { %v1275_v17 = vadd.f32 %v1274_v16, %v1075_v13  ;;  %v1276_v18 = vpop.f32.mrb[6].mxu0  ;;  %v2348_v16 = vld [vmem:[#allocation7 + $0xa4] ss:$8 sps:$4 sm:$0xff]  }
 0x1cd   : > { %v1277_v19 = vadd.f32 %v1276_v18, %v1071_v12  ;;  %v1278_v20 = vpop.f32.mrb[7].mxu0  ;;  %v2342_v12 = vld [vmem:[#allocation7 + $0x84] ss:$8 sps:$4 sm:$0xff]   ;;  %v2351_v18 = vld [vmem:[#allocation7 + $0xb4] ss:$8 sps:$4 sm:$0xff]  }
 0x1ce   : > { %v1279_v21 = vadd.f32 %v1278_v20, %v1075_v13  ;;  %v2340_v13 = vld [vmem:[#allocation7 + $0x80] ss:$8 sps:$4 sm:$0xff]   ;;  %v2354_v20 = vld [vmem:[#allocation7 + $0xc4] ss:$8 sps:$4 sm:$0xff]  }
 0x1cf   : > { %v1287_v22 = vpack.c.bf16 %v1277_v19, %v1273_v15  ;;  %v2343_v15 = vld [vmem:[#allocation7 + $0x90] ss:$8 sps:$4 sm:$0xff]  }
 0x1d0   : > { %v1288_v23 = vpack.c.bf16 %v1279_v21, %v1275_v17  ;;  %v2346_v17 = vld [vmem:[#allocation7 + $0xa0] ss:$8 sps:$4 sm:$0xff]   ;;  %v2349_v19 = vld [vmem:[#allocation7 + $0xb0] ss:$8 sps:$4 sm:$0xff]  }
 0x1d1   : > { %v1349_v24 = vsel %vm1347_vm1, %v1287_v22, 0  ;;  %v2352_v21 = vld [vmem:[#allocation7 + $0xc0] ss:$8 sps:$4 sm:$0xff]   ;;  %v2357_v22 = vld [vmem:[#allocation7 + $0xd4] ss:$8 sps:$4 sm:$0xff]  }
 0x1d2   : > { %v1448_v25 = vsel %vm1347_vm1, %v1288_v23, 0  ;;  %2102 = vmatpush3.bf16.msra.mxu0 %v1349_v24  ;;  %v2355_v23 = vld [vmem:[#allocation7 + $0xd0] ss:$8 sps:$4 sm:$0xff]   ;;  %v2360_v24 = vld [vmem:[#allocation7 + $0xe4] ss:$8 sps:$4 sm:$0xff]  }
 0x1d3   : > { %2114 = vmatpush3.bf16.msra.mxu1 %v1448_v25  ;;  %v2358_v25 = vld [vmem:[#allocation7 + $0xe0] ss:$8 sps:$4 sm:$0xff]  }
 0x1d4   : > { %1698 = vmatprep.subr.bf16.mxu1 %v2318_v48 }
 0x26a   : > { %v1323_v26 = vpop.f32.mrb[8].mxu0 }
 0x26b   : > { %v2099_v27 = vpop.f32.mrb[9].mxu0  ;;  %v1425_v28 = vpop.f32.mrb[4].mxu1  ;;  %v1330_v35 = vsel %vm1329_vm2, %v1323_v26, -inf }
 0x26c   : > { %v1326_v29 = vpop.f32.mrb[10].mxu0  ;;  %v2111_v30 = vpop.f32.mrb[5].mxu1  ;;  %v1431_v31 = vsel %vm1329_vm2, %v1425_v28, -inf  ;;  %v2361_v27 = vld [vmem:[#allocation7 + $0xf0] ss:$8 sps:$4 sm:$0xff]  }
 0x26d   : > { %1432 = vmax.xlane.f32.xlu0 %v1431_v31  ;;  %v2100_v32 = vpop.f32.mrb[11].mxu0  ;;  %v1428_v33 = vpop.f32.mrb[6].mxu1 }
 0x26e   : > { %v2112_v34 = vpop.f32.mrb[7].mxu1 }
 0x271   : > { %1331 = vmax.xlane.f32.xlu0 %v1330_v35 }
 0x2fa   : > { %v1433_v36 = vpop.xlane.xlu0 %1432 }
 0x2fb   : > { %v1434_v37 = vsub.f32 %v1425_v28, %v1433_v36 }
 0x2fd   : > { %v1435_v38 = vmul.f32 1.442695, %v1434_v37 }
 0x2fe   : > { %v1332_v39 = vpop.xlane.xlu0 %1331 }
 0x2ff   : > { %2364 = vpow2.f32 %v1435_v38  ;;  %v1333_v40 = vsub.f32 %v1323_v26, %v1332_v39  ;;  %v2363_v26 = vld [vmem:[#allocation7 + $0xf4] ss:$8 sps:$4 sm:$0xff]   ;;  %v1526_v38 = vld [vmem:[%s2839_s9] sm:$0x3] }
 0x300   : > { %v1531_v39 = vrot.slane %v1526_v38, %v2773_v45 }
 0x301   : > { %v1334_v41 = vmul.f32 1.442695, %v1333_v40  ;;  %v1535_v40 = vrot.slane %v1526_v38, %v2778_v47 }
 0x303   : > { %2366 = vpow2.f32 %v1334_v41 }
 0x309   : > { %v2365_v42 = vpop.eup %2364 }
 0x30a   : > { %v1437_v43 = vsel %vm1329_vm2, %v2365_v42, 0.0 }
 0x30b   : > { %1438 = vadd.xlane.f32.xlu1 %v1437_v43 }
 0x30d   : > { %v2367_v44 = vpop.eup %2366 }
 0x30e   : > { %v1336_v46 = vsel %vm1329_vm2, %v2367_v44, 0.0 }
 0x30f   : > { %1337 = vadd.xlane.f32.xlu1 %v1336_v46 }
 0x398   : > { %v1439_v49 = vpop.xlane.xlu1 %1438 }
 0x399   : > { %2368 = vrcp.f32 %v1439_v49 }
 0x39c   : > { %v1338_v50 = vpop.xlane.xlu1 %1337 }
 0x39d   : > { %2370 = vrcp.f32 %v1338_v50 }
 0x3a3   : > { %v2369_v52 = vpop.eup %2368 }
 0x3a4   : > { %v1441_v53 = vmul.f32 %v2369_v52, %v2365_v42 }
 0x3a6   : > { %v1443_v55 = vpack.c.bf16 %v1441_v53, %v1441_v53 }
 0x3a7   : > { %v2371_v57 = vpop.eup %2370 }
 0x3a8   : > { %v1340_v58 = vmul.f32 %v2371_v57, %v2367_v44  ;;  %2116 = vmatmul.mubr.msk.bf16.vlgmr.msra.gmra.mrb[8].mxu1 %vm1343_vm3, %v1443_v55 }
 0x3a9   : > { %1699 = vmatpush1.bf16.msra.mxu1 %v2316_v54 }
 0x3aa   : > { %v1442_v60 = vadd.f32 %v1441_v53, %v1340_v58  ;;  %v1342_v61 = vpack.c.bf16 %v1340_v58, %v1340_v58  ;;  %1700 = vmatprep.subr.bf16.mxu1 %v2321_v56 }
 0x3ac   : > { %v1490_v63 = vmul.f32 0.5, %v1442_v60  ;;  %2104 = vmatmul.mubr.msk.bf16.vlgmr.msra.gmra.mrb[12].mxu0 %vm1343_vm3, %v1342_v61 }
 0x3ad   : > { %1701 = vmatpush1.bf16.msra.mxu1 %v2319_v59 }
 0x3ae   : > { %1491 = vst.msk [vmem:[%s530_s14] sm:$0x7f] %vm1329_vm2, %v1490_v63  ;;  %1702 = vmatprep.subr.bf16.mxu1 %v2324_v62 }
 0x3b1   : > { %1703 = vmatpush1.bf16.msra.mxu1 %v2322_v0 }
 0x3b2   : > { %1704 = vmatprep.subr.bf16.mxu1 %v2327_v1 }
 0x3b5   : > { %1705 = vmatpush1.bf16.msra.mxu1 %v2325_v2  ;;  %v1777_v2 = vld [vmem:[%s2860_s11] sm:$0x3] }
 0x3b6   : > { %1706 = vmatprep.subr.bf16.mxu1 %v2330_v3 }
 0x3b9   : > { %1707 = vmatpush1.bf16.msra.mxu1 %v2328_v4 }
 0x3ba   : > { %1708 = vmatprep.subr.bf16.mxu1 %v2333_v5 }
 0x3bd   : > { %1709 = vmatpush1.bf16.msra.mxu1 %v2331_v6  ;;  %v1782_v6 = vrot.slane %v1777_v2, %v2773_v45 }
 0x3be   : > { %1710 = vmatprep.subr.bf16.mxu1 %v2336_v7  ;;  %v1786_v7 = vrot.slane %v1777_v2, %v2778_v47 }
 0x3c1   : > { %1711 = vmatpush1.bf16.msra.mxu1 %v2334_v9 }
 0x3c2   : > { %1712 = vmatprep.subr.bf16.mxu1 %v2339_v10 }
 0x3c5   : > { %1713 = vmatpush1.bf16.msra.mxu1 %v2337_v11 }
 0x3c6   : > { %1714 = vmatprep.subr.bf16.mxu1 %v2342_v12 }
 0x3c9   : > { %1715 = vmatpush1.bf16.msra.mxu1 %v2340_v13 }
 0x3ca   : > { %1716 = vmatprep.subr.bf16.mxu1 %v2345_v14 }
 0x3cd   : > { %1717 = vmatpush1.bf16.msra.mxu1 %v2343_v15 }
 0x3ce   : > { %1718 = vmatprep.subr.bf16.mxu1 %v2348_v16 }
 0x3d1   : > { %1719 = vmatpush1.bf16.msra.mxu1 %v2346_v17 }
 0x3d2   : > { %1720 = vmatprep.subr.bf16.mxu1 %v2351_v18 }
 0x3d5   : > { %1721 = vmatpush1.bf16.msra.mxu1 %v2349_v19 }
 0x3d6   : > { %1722 = vmatprep.subr.bf16.mxu1 %v2354_v20 }
 0x3d9   : > { %1723 = vmatpush1.bf16.msra.mxu1 %v2352_v21 }
 0x3da   : > { %1724 = vmatprep.subr.bf16.mxu1 %v2357_v22 }
 0x3dd   : > { %1725 = vmatpush1.bf16.msra.mxu1 %v2355_v23 }
 0x3de   : > { %1726 = vmatprep.subr.bf16.mxu1 %v2360_v24 }
 0x3e1   : > { %1727 = vmatpush1.bf16.msra.mxu1 %v2358_v25 }
 0x3e2   : > { %1728 = vmatprep.subr.bf16.mxu1 %v2363_v26 }
 0x3e5   : > { %1729 = vmatpush1.bf16.msra.mxu1 %v2361_v27 }
 0x47b   : > { %v1484_v28 = vpop.f32.mrb[8].mxu1 }
 0x47c   : > { %v1493_v29 = vpack.c.bf16 %v1484_v28, %v1484_v28  ;;  %v2117_v30 = vpop.f32.mrb[9].mxu1 }
 0x47d   : > { %v1487_v31 = vpop.f32.mrb[10].mxu1 }
 0x47e   : > { %v2118_v32 = vpop.f32.mrb[11].mxu1  ;;  %1730 = vmatprep.mubr.bf16.mxu1 %v1493_v29 }
 0x47f   : > { %v1385_v33 = vpop.f32.mrb[12].mxu0 }
 0x480   : > { %v1492_v34 = vpack.c.bf16 %v1385_v33, %v1385_v33  ;;  %v2105_v35 = vpop.f32.mrb[13].mxu0 }
 0x481   : > { %v1388_v36 = vpop.f32.mrb[14].mxu0 }
 0x482   : > { %v2106_v37 = vpop.f32.mrb[15].mxu0  ;;  %1731 = vmatmul.mubr.bf16.vlgmr.msra.gmra.mrb[12].mxu1 %v1492_v34 }
 0x555   : > { %v1732_v41 = vpop.f32.mrb[12].mxu1 }
 0x556   : > { %v1733_v42 = vadd.f32 %v1732_v41, %v1531_v39  ;;  %v1734_v43 = vpop.f32.mrb[13].mxu1 }
 0x557   : > { %v1735_v44 = vadd.f32 %v1734_v43, %v1535_v40  ;;  %v1736_v46 = vpop.f32.mrb[14].mxu1 }
 0x558   : > { %v1739_v48 = vadd.f32 %v1733_v42, %v2765_v8  ;;  %v1737_v49 = vpop.f32.mrb[15].mxu1 }
 0x559   : > { %v1740_v50 = vadd.f32 %v1735_v44, %v2756_v51  ;;  %v1763_v51 = vld [vmem:[%s2840_s10] sm:$0x3] }
 0x55a   : > { %v1742_v52 = vsel %vm1741_vm4, %v1739_v48, 0.0  ;;  %v1768_v3 = vrot.slane %v1763_v51, %v2773_v45  ;;  %v1772_v4 = vrot.slane %v1763_v51, %v2778_v47 }
 0x55b   : > { %v1743_v53 = vsel %vm1741_vm4, %v1740_v50, 0.0 }
 0x55c   : > { %v1744_v54 = vadd.f32 %v1743_v53, %v1742_v52 }
 0x55e   : > { %1745 = vadd.xlane.f32.xlu0 %v1744_v54 }
 0x5eb   : > { %v1746_v55 = vpop.xlane.xlu0 %1745 }
 0x5ec   : > { %v1748_v56 = vmul.f32 0.00390625, %v1746_v55 }
 0x5ee   : > { %v1749_v57 = vsub.f32 %v1739_v48, %v1748_v56  ;;  %v1750_v58 = vsub.f32 %v1740_v50, %v1748_v56 }
 0x5f0   : > { %v1751_v59 = vmul.f32 %v1749_v57, %v1749_v57  ;;  %v1752_v60 = vmul.f32 %v1750_v58, %v1750_v58 }
 0x5f2   : > { %v1753_v61 = vsel %vm1741_vm4, %v1751_v59, 0.0  ;;  %v1754_v62 = vsel %vm1741_vm4, %v1752_v60, 0.0 }
 0x5f3   : > { %v1755_v63 = vadd.f32 %v1754_v62, %v1753_v61 }
 0x5f5   : > { %1756 = vadd.xlane.f32.xlu1 %v1755_v63 }
 0x682   : > { %v1757_v0 = vpop.xlane.xlu1 %1756 }
 0x683   : > { %v1758_v8 = vmul.f32 0.00390625, %v1757_v0 }
 0x685   : > { %v1759_v1 = vadd.f32 1e-05, %v1758_v8 }
 0x687   : > { %2372 = vrsqrt.f32 %v1759_v1 }
 0x691   : > { %v2373_v5 = vpop.eup %2372 }
 0x692   : > { %v1761_v9 = vmul.f32 %v2373_v5, %v1749_v57  ;;  %v1762_v10 = vmul.f32 %v2373_v5, %v1750_v58 }
 0x694   : > { %v1775_v11 = vmul.f32 %v1768_v3, %v1761_v9  ;;  %v1776_v12 = vmul.f32 %v1772_v4, %v1762_v10 }
 0x696   : > { %v1789_v13 = vadd.f32 %v1782_v6, %v1775_v11  ;;  %v1790_v14 = vadd.f32 %v1786_v7, %v1776_v12 }
 0x698   : > { %1791 = vst [vmem:[%s526_s23] sm:$0x7f] %v1789_v13  ;;  %1792 = vst [vmem:[%s526_s23 + $0x8] sm:$0x7f] %v1790_v14 }
 0x699 PF: > { %s2862_s24 = sld [smem:[#allocation12_spill]] }
 0x69f   : > { %s27_s25 = sadd.s32 1, %s2862_s24  }
 0x6a0   : > { %p24_p6 = scmp.ge.s32.totalorder %s27_s25, 4  }
 0x6a2   :  { %26 = sbr.rel (!%p24_p6) target bundleno = 6 (0x6), region = 130 }
 0x6a9   :  { %1828 = vsyncpa [#allocation3], 1 }
 0x6aa   :  { %1830 = vsyncpa [#allocation3 + $0x1], 1 }
 0x6ab   :  { %1831 = vsyncpa [#allocation5], 1 }
 0x6ac   :  { %1832 = vsyncpa [#allocation8], 1 }

</bundles_post_ra>
